<compile_context>
chip_gen: v7x
topology: tpu7x:2x2x1
jax: 0.10.0
libtpu: 0.0.40
codegen_flags: <defaults>
</compile_context>

<pallas_src>
import math

import jax
import jax.numpy as jnp
import numpy as np
from jax.experimental import pallas as pl
from jax.experimental.pallas import tpu as pltpu


def _roi_kernel(coords_ref, colmap_ref, feats_ref, out_ref):
    """One grid step: pool TB boxes (R = TB*HH*WW stacked output rows).

    coords_ref: (R, 2)   f32   [:, 0] = iy, [:, 1] = ix of each output row
    colmap_ref: (2, HW)  f32   row 0 = h index of each feature column, row 1 = w
    feats_ref : (HW, Cp) bf16  feature slab, row h*W+w, channels on lanes
    out_ref   : (R, Cp)        pooled features (lane-dense store)
    """
    iy = coords_ref[:, 0:1]                               # (R, 1)
    ix = coords_ref[:, 1:2]                               # (R, 1)
    hcol = colmap_ref[0:1, :]                             # (1, HW)
    wcol = colmap_ref[1:2, :]                             # (1, HW)

    # Rank-1 bilinear tent weights evaluated per (row, column): pure VPU
    # elementwise work, no reshapes / gathers / integer div.
    wy = jnp.maximum(1.0 - jnp.abs(iy - hcol), 0.0)       # (R, HW)
    wx = jnp.maximum(1.0 - jnp.abs(ix - wcol), 0.0)       # (R, HW)
    wt = (wy * wx).astype(jnp.bfloat16)                   # (R, HW)

    acc = jnp.dot(wt, feats_ref[...], preferred_element_type=jnp.float32)
    out_ref[...] = acc.astype(out_ref.dtype)


def _round_up(x, m):
    return -(-x // m) * m


def bilinear_roi_pooling(feats, boxes, img_height, img_width,
                         out_h=7, out_w=7, box_tile=16,
                         out_dtype=jnp.float32, channels_last=False):
    """feats: (C, H, W); boxes: (B, 4) = (xc, yc, w, h) in image coordinates.

    Returns (B, C, out_h, out_w) float (module layout) or (B, out_h, out_w, C)
    when channels_last=True (skips the final lane-sparse transpose; preferred
    when the consumer can take channels-last).  out_dtype=jnp.bfloat16 halves
    HBM writeback (useful on v5e/v6e).
    """
    C, H, W = feats.shape
    B = boxes.shape[0]
    HH, WW = int(out_h), int(out_w)
    HW = H * W
    C_pad = _round_up(C, 128)                  # lane-dense feats / output blocks
    rows_per_box = HH * WW

    # ---- box tile (TB) selection -------------------------------------------
    g = 8 // math.gcd(rows_per_box, 8)         # makes TB*HH*WW a multiple of 8
    TB = max(1, int(box_tile))
    n_target = 2 if B > 8 else 1               # >=2 grid steps -> v7x uses both TCs
    TB = min(TB, max(1, -(-B // n_target)))
    TB = _round_up(TB, g)

    out_isz = np.dtype(out_dtype).itemsize

    def vmem_need(tb):
        r = tb * rows_per_box
        feats_b = HW * C_pad * 2               # bf16 slab, single buffered
        colmap_b = 2 * HW * 4                  # single buffered
        coords_b = 2 * r * 2 * 4               # double buffered
        out_b = 2 * r * C_pad * out_isz        # double buffered
        wt_b = r * HW * (3 * 4 + 2)            # weight-build temporaries (f32 + bf16)
        return feats_b + colmap_b + coords_b + out_b + wt_b

    try:
        vmem_cap = int(pltpu.get_tpu_info().vmem_capacity_bytes)
    except Exception:                          # conservative default (v7x: 64 MiB)
        vmem_cap = 64 * 2**20
    budget = int(0.70 * vmem_cap)
    while TB > g and vmem_need(TB) > budget:   # shrink the box tile if VMEM-bound
        TB = _round_up(max(g, TB // 2), g)

    B_pad = _round_up(B, TB)
    num_tiles = B_pad // TB
    R_blk = TB * rows_per_box
    vmem_limit = int(min(int(0.75 * vmem_cap),
                         max(32 * 2**20, vmem_need(TB) + (8 << 20))))

    # ---- hoisted box -> sample-coordinate math ------------------------------
    img_h = float(img_height)
    img_w = float(img_width)
    boxes = boxes.astype(jnp.float32)
    xc, yc, bw, bh = boxes[:, 0], boxes[:, 1], boxes[:, 2], boxes[:, 3]

    # box_utils.box_to_affine -> theta (normalized [-1,1] half-extent + center).
    # TODO(synk): box_to_affine is not provided upstream; this is the standard
    # (xc, yc, w, h) -> affine mapping under legacy align_corners=True
    # F.affine_grid / F.grid_sample semantics (same math as _reference below).
    tx_s = bw / img_w
    tx_o = (2.0 * xc - img_w) / img_w
    ty_s = bh / img_h
    ty_o = (2.0 * yc - img_h) / img_h

    y_norm = 2.0 * jnp.arange(HH, dtype=jnp.float32) / max(HH - 1, 1) - 1.0
    x_norm = 2.0 * jnp.arange(WW, dtype=jnp.float32) / max(WW - 1, 1) - 1.0
    iy = (ty_s[:, None] * y_norm[None, :] + ty_o[:, None] + 1.0) * 0.5 * (H - 1)  # (B, HH)
    ix = (tx_s[:, None] * x_norm[None, :] + tx_o[:, None] + 1.0) * 0.5 * (W - 1)  # (B, WW)

    pad = B_pad - B
    iy = jnp.pad(iy, ((0, pad), (0, 0)))
    ix = jnp.pad(ix, ((0, pad), (0, 0)))
    # One packed per-output-row coordinate array -> a single small DMA per step.
    iy_rows = jnp.broadcast_to(iy[:, :, None], (B_pad, HH, WW)).reshape(-1)
    ix_rows = jnp.broadcast_to(ix[:, None, :], (B_pad, HH, WW)).reshape(-1)
    coords = jnp.stack([iy_rows, ix_rows], axis=1)                    # (B_pad*HH*WW, 2)

    # Tiny resident (h, w) column table (avoids in-kernel int div/mod on iota).
    col = jnp.arange(HW, dtype=jnp.int32)
    colmap = jnp.stack([(col // W).astype(jnp.float32),
                        (col % W).astype(jnp.float32)], axis=0)       # (2, HW)

    # Feature slab (H*W, C_pad) bf16 (MXU-native input; channels zero-padded).
    # TODO(synk): when many RoI calls reuse the same feature map, hoist this
    # relayout/cast out of the per-call wrapper (or accept a pre-laid-out slab).
    feats2d = jnp.transpose(feats, (1, 2, 0)).reshape(HW, C)
    feats2d = jnp.pad(feats2d, ((0, 0), (0, C_pad - C))).astype(jnp.bfloat16)

    out = pl.pallas_call(
        _roi_kernel,
        out_shape=jax.ShapeDtypeStruct((B_pad * rows_per_box, C_pad), out_dtype),
        grid_spec=pltpu.PrefetchScalarGridSpec(
            num_scalar_prefetch=0,
            grid=(num_tiles,),
            in_specs=[
                pl.BlockSpec((R_blk, 2), lambda t: (t, 0)),           # per-row coords
                pl.BlockSpec((2, HW), lambda t: (0, 0),               # resident col table
                             pipeline_mode=pl.Buffered(1)),
                pl.BlockSpec((HW, C_pad), lambda t: (0, 0),           # resident feats slab
                             pipeline_mode=pl.Buffered(1)),
            ],
            out_specs=pl.BlockSpec((R_blk, C_pad), lambda t: (t, 0)),
        ),
        compiler_params=pltpu.CompilerParams(
            dimension_semantics=("parallel",),    # boxes independent (v7x: 2 TCs)
            vmem_limit_bytes=vmem_limit),
    )(coords, colmap, feats2d)

    out = out.reshape(B_pad, HH, WW, C_pad)[:B, :, :, :C]             # (B, HH, WW, C)
    if channels_last:
        return out
    # TODO(synk): this transpose is an extra HBM round trip with a lane dim of
    # out_w; prefer channels_last=True when the downstream consumer allows it.
    return jnp.transpose(out, (0, 3, 1, 2))                           # (B, C, HH, WW)


def _reference(feats, boxes, img_height, img_width, out_h, out_w):
    """Pure-JAX f32 reference with identical sampling math."""
    C, H, W = feats.shape
    xc, yc, bw, bh = boxes[:, 0], boxes[:, 1], boxes[:, 2], boxes[:, 3]
    tx_s, tx_o = bw / img_width, (2.0 * xc - img_width) / img_width
    ty_s, ty_o = bh / img_height, (2.0 * yc - img_height) / img_height
    x_norm = 2.0 * jnp.arange(out_w, dtype=jnp.float32) / max(out_w - 1, 1) - 1.0
    y_norm = 2.0 * jnp.arange(out_h, dtype=jnp.float32) / max(out_h - 1, 1) - 1.0
    gx = tx_s[:, None] * x_norm[None, :] + tx_o[:, None]              # (B, WW)
    gy = ty_s[:, None] * y_norm[None, :] + ty_o[:, None]              # (B, HH)
    ix = (gx + 1.0) * 0.5 * (W - 1)
    iy = (gy + 1.0) * 0.5 * (H - 1)
    wcols = jnp.arange(W, dtype=jnp.float32)
    hrows = jnp.arange(H, dtype=jnp.float32)
    wx = jnp.maximum(0.0, 1.0 - jnp.abs(ix[..., None] - wcols))       # (B, WW, W)
    wy = jnp.maximum(0.0, 1.0 - jnp.abs(iy[..., None] - hrows))       # (B, HH, H)
    return jnp.einsum('bih,bjw,chw->bcij', wy, wx, feats)             # (B, C, HH, WW)


if __name__ == "__main__":
    key = jax.random.PRNGKey(0)
    k_feat, k_cx, k_cy, k_sz = jax.random.split(key, 4)

    C, H, W = 4, 16, 16          # feature map (C, H, W)
    B = 3                        # number of RoIs
    img_h, img_w = 48, 80        # non-square image (exercises height/width handling)
    HH = WW = 7                  # pooled output size

    feats = jax.random.normal(k_feat, (C, H, W), dtype=jnp.float32)
    cx = jax.random.uniform(k_cx, (B, 1), minval=16.0, maxval=64.0)
    cy = jax.random.uniform(k_cy, (B, 1), minval=10.0, maxval=38.0)
    sz = jax.random.uniform(k_sz, (B, 2), minval=8.0, maxval=24.0)
    boxes = jnp.concatenate([cx, cy, sz], axis=1)      # (xc, yc, w, h)

    out = bilinear_roi_pooling(feats, boxes, img_h, img_w, out_h=HH, out_w=WW)
    out = jax.block_until_ready(out)
    assert out.shape == (B, C, HH, WW), out.shape

    ref = _reference(feats, boxes, float(img_h), float(img_w), HH, WW)
    err = float(jnp.max(jnp.abs(out - ref)))
    # bf16 feats / bf16 tent weights on the MXU vs. an f32 reference: ~0.5% budget.
    assert jnp.allclose(out, ref, atol=5e-2, rtol=5e-2), err

    print("KERNEL_OK")
</pallas_src>

<mosaic_0001>
module attributes {stable_mosaic.version = 11 : i64} {
  func.func @_roi_kernel(%arg0: i32, %arg1: memref<392x2xf32, #tpu.memory_space<vmem>>, %arg2: memref<2x256xf32, #tpu.memory_space<vmem>>, %arg3: memref<256x128xbf16, #tpu.memory_space<vmem>>, %arg4: memref<392x128xf32, #tpu.memory_space<vmem>>) attributes {dimension_semantics = [#tpu.dimension_semantics<parallel>], iteration_bounds = array<i64: 1>, scalar_prefetch = 0 : i64, scratch_operands = 0 : i64, tpu.core_type = #tpu.core_type<tc>, window_params = [{transform_indices = @transform_0, window_bounds = array<i64: 392, 2>}, {pipeline_mode = #tpu.pipeline_mode<synchronous>, transform_indices = @transform_1, window_bounds = array<i64: 2, 256>}, {pipeline_mode = #tpu.pipeline_mode<synchronous>, transform_indices = @transform_2, window_bounds = array<i64: 256, 128>}, {transform_indices = @transform_3, window_bounds = array<i64: 392, 128>}]} {
    %c0 = arith.constant 0 : index
    %c0_0 = arith.constant 0 : index
    %0 = vector.load %arg1[%c0, %c0_0] : memref<392x2xf32, #tpu.memory_space<vmem>>, vector<392x1xf32>
    %c0_1 = arith.constant 0 : index
    %c1 = arith.constant 1 : index
    %1 = vector.load %arg1[%c0_1, %c1] : memref<392x2xf32, #tpu.memory_space<vmem>>, vector<392x1xf32>
    %c0_2 = arith.constant 0 : index
    %c0_3 = arith.constant 0 : index
    %2 = vector.load %arg2[%c0_2, %c0_3] : memref<2x256xf32, #tpu.memory_space<vmem>>, vector<1x256xf32>
    %c1_4 = arith.constant 1 : index
    %c0_5 = arith.constant 0 : index
    %3 = vector.load %arg2[%c1_4, %c0_5] : memref<2x256xf32, #tpu.memory_space<vmem>>, vector<1x256xf32>
    %4 = vector.broadcast %0 : vector<392x1xf32> to vector<392x256xf32>
    %5 = vector.broadcast %2 : vector<1x256xf32> to vector<392x256xf32>
    %6 = arith.subf %4, %5 : vector<392x256xf32>
    %7 = math.absf %6 : vector<392x256xf32>
    %cst = arith.constant 1.000000e+00 : f32
    %8 = vector.broadcast %cst : f32 to vector<392x256xf32>
    %9 = arith.subf %8, %7 : vector<392x256xf32>
    %cst_6 = arith.constant 0.000000e+00 : f32
    %10 = vector.broadcast %cst_6 : f32 to vector<392x256xf32>
    %11 = arith.maximumf %9, %10 : vector<392x256xf32>
    %12 = vector.broadcast %1 : vector<392x1xf32> to vector<392x256xf32>
    %13 = vector.broadcast %3 : vector<1x256xf32> to vector<392x256xf32>
    %14 = arith.subf %12, %13 : vector<392x256xf32>
    %15 = math.absf %14 : vector<392x256xf32>
    %cst_7 = arith.constant 1.000000e+00 : f32
    %16 = vector.broadcast %cst_7 : f32 to vector<392x256xf32>
    %17 = arith.subf %16, %15 : vector<392x256xf32>
    %cst_8 = arith.constant 0.000000e+00 : f32
    %18 = vector.broadcast %cst_8 : f32 to vector<392x256xf32>
    %19 = arith.maximumf %17, %18 : vector<392x256xf32>
    %20 = arith.mulf %11, %19 : vector<392x256xf32>
    %21 = arith.truncf %20 : vector<392x256xf32> to vector<392x256xbf16>
    %c0_9 = arith.constant 0 : index
    %c0_10 = arith.constant 0 : index
    %22 = vector.load %arg3[%c0_9, %c0_10] : memref<256x128xbf16, #tpu.memory_space<vmem>>, vector<256x128xbf16>
    %cst_11 = arith.constant dense<0.000000e+00> : vector<392x128xf32>
    %23 = tpu.matmul %21, %22, %cst_11 {dimension_numbers = #tpu.dot_dimension_numbers<[1], [0], [0], [1], [0, 0, 1, 1], [], []>} : vector<392x256xbf16>, vector<256x128xbf16>, vector<392x128xf32> -> vector<392x128xf32>
    %c0_12 = arith.constant 0 : index
    %c0_13 = arith.constant 0 : index
    %24 = vector.load %arg4[%c0_12, %c0_13] : memref<392x128xf32, #tpu.memory_space<vmem>>, vector<392x128xf32>
    tpu.vector_store %arg4[%c0_12, %c0_13], %23 {strides = array<i32>} : memref<392x128xf32, #tpu.memory_space<vmem>>, vector<392x128xf32>,
    return
  }
  func.func @transform_0(%arg0: i32) -> (i32, i32) {
    %c0_i32 = arith.constant 0 : i32
    %c0_i32_0 = arith.constant 0 : i32
    return %arg0, %c0_i32 : i32, i32
  }
  func.func @transform_1(%arg0: i32) -> (i32, i32) {
    %c0_i32 = arith.constant 0 : i32
    %c0_i32_0 = arith.constant 0 : i32
    %c0_i32_1 = arith.constant 0 : i32
    return %c0_i32, %c0_i32_0 : i32, i32
  }
  func.func @transform_2(%arg0: i32) -> (i32, i32) {
    %c0_i32 = arith.constant 0 : i32
    %c0_i32_0 = arith.constant 0 : i32
    %c0_i32_1 = arith.constant 0 : i32
    return %c0_i32, %c0_i32_0 : i32, i32
  }
  func.func @transform_3(%arg0: i32) -> (i32, i32) {
    %c0_i32 = arith.constant 0 : i32
    %c0_i32_0 = arith.constant 0 : i32
    return %arg0, %c0_i32 : i32, i32
  }
}

</mosaic_0001>

<bundles_post_ra>
// kernel: tpu_custom_call.1
= control target key start
LH: loop header
LB: loop body
LE: loop exit
PB: predicated region body
PF: predicated region fallthrough
CT: control target
= control target key end

     0   :  { %v2854_v2 = vmov 1   ;;  %v2852_v5 = vmov 0   ;;  %s2848_s0 = inlined_call_operand.vmem [shape: f32[392,2], index: 0, kind: input, shape index: {}]   ;;  %s2849_s1 = inlined_call_operand.vmem [shape: f32[2,256], index: 1, kind: input, shape index: {}]   ;;  %s2850_s2 = inlined_call_operand.vmem [shape: bf16[256,128], index: 2, kind: input, shape index: {}]   ;;  %s2851_s3 = inlined_call_operand.hbm [shape: f32[392,128], index: 3, kind: output, shape index: {}]  }
   0x1   :  { %v2063_v0 = vld [vmem:[%s2848_s0 + $0x10] sm:$0xff]  ;;  %v2068_v1 = vld [vmem:[%s2848_s0] sm:$0xff]  ;;  %1944 = vset.pattern.permute.xlu0 %v2854_v2  ;;  %1942 = vset.pattern.permute.xlu1 %v2854_v2  ;;  %v2082_v4 = vld [vmem:[%s2848_s0 + $0x8] sm:$0xff] }
   0x2   :  { %725 = vperm.xlu0 %1944, %v2063_v0   ;;  %717 = vperm.xlu1 %1942, %v2068_v1   ;;  %v2077_v3 = vld [vmem:[%s2848_s0 + $0x20] sm:$0xff]  ;;  %v2091_v6 = vld [vmem:[%s2848_s0 + $0x30] sm:$0xff]  ;;  %v19_v7 = vld [vmem:[%s2848_s0 + $0x18] sm:$0xff] }
   0x3   :  { %1591 = vmatprep.subr.bf16.mxu0 %v2852_v5  ;;  %1905 = vmatprep.subr.bf16.mxu1 %v2852_v5  ;;  %v2101_v8 = vld [vmem:[%s2848_s0 + $0x40] sm:$0xff]  ;;  %v1994_v10 = vld [vmem:[%s2850_s2 + $0x8] sm:$0xff]   ;;  %v2115_v11 = vld [vmem:[%s2848_s0 + $0x50] sm:$0xff] }
   0x4   :  { %v1993_v9 = vld [vmem:[%s2850_s2] sm:$0xff]   ;;  %v42_v12 = vld [vmem:[%s2848_s0 + $0xd0] sm:$0xff]  ;;  %v1996_v15 = vld [vmem:[%s2850_s2 + $0x18] sm:$0xff]  }
   0x5   :  { %1592 = vmatpush1.bf16.msra.mxu0 %v1993_v9  ;;  %1921 = vmatpush1.bf16.msra.mxu1 %v1993_v9  ;;  %v2124_v13 = vld [vmem:[%s2848_s0 + $0x60] sm:$0xff]  ;;  %v1995_v14 = vld [vmem:[%s2850_s2 + $0x10] sm:$0xff]  }
   0x6   :  { %733 = vperm.xlu0 %1944, %v2077_v3   ;;  %721 = vperm.xlu1 %1942, %v2082_v4   ;;  %v2139_v16 = vld [vmem:[%s2848_s0 + $0x70] sm:$0xff]  ;;  %v1997_v17 = vld [vmem:[%s2850_s2 + $0x20] sm:$0xff]  }
   0x7   :  { %1593 = vmatprep.subr.bf16.mxu0 %v2852_v5  ;;  %1906 = vmatprep.subr.bf16.mxu1 %v2852_v5 }
   0x9   :  { %1594 = vmatpush1.bf16.msra.mxu0 %v1994_v10  ;;  %1922 = vmatpush1.bf16.msra.mxu1 %v1994_v10 }
   0xa   :  { %741 = vperm.xlu0 %1944, %v2091_v6   ;;  %1943 = vset.pattern.permute.xlu1 %v2852_v5 }
   0xb   :  { %85 = vperm.xlu1 %1943, %v19_v7   ;;  %1595 = vmatprep.subr.bf16.mxu0 %v2852_v5 }
   0xc   :  { %1907 = vmatprep.subr.bf16.mxu1 %v2852_v5 }
   0xd   :  { %1596 = vmatpush1.bf16.msra.mxu0 %v1995_v14  ;;  %1923 = vmatpush1.bf16.msra.mxu1 %v1995_v14 }
   0xe   :  { %749 = vperm.xlu0 %1944, %v2101_v8   ;;  %1597 = vmatprep.subr.bf16.mxu0 %v2852_v5 }
   0xf   :  { %1945 = vset.pattern.permute.xlu1 %v2854_v2  ;;  %1908 = vmatprep.subr.bf16.mxu1 %v2852_v5 }
  0x10   :  { %729 = vperm.xlu1 %1945, %v19_v7  }
  0x11   :  { %1598 = vmatpush1.bf16.msra.mxu0 %v1996_v15 }
  0x12   :  { %757 = vperm.xlu0 %1944, %v2115_v11  }
  0x14   :  { %1946 = vset.pattern.permute.xlu1 %v2852_v5 }
  0x15   :  { %200 = vperm.xlu1 %1946, %v42_v12  }
  0x16   :  { %765 = vperm.xlu0 %1944, %v2124_v13  }
  0x19   :  { %1947 = vset.pattern.permute.xlu1 %v2854_v2 }
  0x1a   :  { %8 = vsyncpa [#allocation3], 0  ;;  %773 = vperm.xlu0 %1944, %v2139_v16   ;;  %821 = vperm.xlu1 %1947, %v42_v12   ;;  %v2152_v18 = vld [vmem:[%s2848_s0 + $0x80] sm:$0xff]  ;;  %v2157_v19 = vld [vmem:[%s2848_s0 + $0xd8] sm:$0xff]  ;;  %v314_v56 = vlaneseq }
  0x1b   :  { %1599 = vmatprep.subr.bf16.mxu0 %v2852_v5  ;;  %1924 = vmatpush1.bf16.msra.mxu1 %v1996_v15  ;;  %v1998_v20 = vld [vmem:[%s2850_s2 + $0x28] sm:$0xff]   ;;  %v2169_v21 = vld [vmem:[%s2848_s0 + $0x90] sm:$0xff]  ;;  %v2184_v24 = vld [vmem:[%s2848_s0 + $0xa0] sm:$0xff] }
  0x1c   :  { %1909 = vmatprep.subr.bf16.mxu1 %v2852_v5  ;;  %1600 = vmatpush1.bf16.msra.mxu0 %v1997_v17  ;;  %v21_v22 = vld [vmem:[%s2848_s0 + $0x28] sm:$0xff]  ;;  %v1999_v23 = vld [vmem:[%s2850_s2 + $0x30] sm:$0xff]   ;;  %v2000_v25 = vld [vmem:[%s2850_s2 + $0x38] sm:$0xff]   ;;  %v315_v61 = vshrl.u32 %v314_v56, 7 }
  0x1d   :  { %1601 = vmatprep.subr.bf16.mxu0 %v2852_v5  ;;  %v2197_v26 = vld [vmem:[%s2848_s0 + $0xb0] sm:$0xff]  ;;  %v2001_v27 = vld [vmem:[%s2850_s2 + $0x40] sm:$0xff]   ;;  %v2002_v29 = vld [vmem:[%s2850_s2 + $0x48] sm:$0xff]  }
  0x1e   :  { %781 = vperm.xlu0 %1944, %v2152_v18   ;;  %825 = vperm.xlu1 %1947, %v2157_v19   ;;  %v44_v28 = vld [vmem:[%s2848_s0 + $0xe0] sm:$0xff]  ;;  %v2003_v30 = vld [vmem:[%s2850_s2 + $0x50] sm:$0xff]   ;;  %v45_v31 = vld [vmem:[%s2848_s0 + $0xe8] sm:$0xff] }
  0x1f   :  { %1925 = vmatpush1.bf16.msra.mxu1 %v1997_v17  ;;  %v2004_v32 = vld [vmem:[%s2850_s2 + $0x58] sm:$0xff]   ;;  %v2005_v34 = vld [vmem:[%s2850_s2 + $0x60] sm:$0xff]   ;;  %v2006_v35 = vld [vmem:[%s2850_s2 + $0x68] sm:$0xff]  }
  0x20   :  { %1910 = vmatprep.subr.bf16.mxu1 %v2852_v5  ;;  %1602 = vmatpush1.bf16.msra.mxu0 %v1998_v20  ;;  %v23_v33 = vld [vmem:[%s2848_s0 + $0x38] sm:$0xff]  ;;  %v2007_v36 = vld [vmem:[%s2850_s2 + $0x70] sm:$0xff]   ;;  %v49_v40 = vld [vmem:[%s2848_s0 + $0x108] sm:$0xff] }
  0x21   :  { %1603 = vmatprep.subr.bf16.mxu0 %v2852_v5  ;;  %v46_v37 = vld [vmem:[%s2848_s0 + $0xf0] sm:$0xff]  ;;  %v2008_v38 = vld [vmem:[%s2850_s2 + $0x78] sm:$0xff]   ;;  %v25_v41 = vld [vmem:[%s2848_s0 + $0x48] sm:$0xff] }
  0x22   :  { %789 = vperm.xlu0 %1944, %v2169_v21   ;;  %1948 = vset.pattern.permute.xlu1 %v2852_v5  ;;  %v47_v39 = vld [vmem:[%s2848_s0 + $0xf8] sm:$0xff]  ;;  %v48_v43 = vld [vmem:[%s2848_s0 + $0x100] sm:$0xff]  ;;  %v2290_v44 = vld [vmem:[%s2848_s0 + $0x128] sm:$0xff] }
  0x23   :  { %95 = vperm.xlu1 %1948, %v21_v22   ;;  %1926 = vmatpush1.bf16.msra.mxu1 %v1998_v20  ;;  %v51_v42 = vld [vmem:[%s2848_s0 + $0x118] sm:$0xff]  ;;  %v2310_v47 = vld [vmem:[%s2848_s0 + $0x148] sm:$0xff]  ;;  %v50_v48 = vld [vmem:[%s2848_s0 + $0x110] sm:$0xff] }
  0x24   :  { %1604 = vmatpush1.bf16.msra.mxu0 %v1999_v23  ;;  %1911 = vmatprep.subr.bf16.mxu1 %v2852_v5  ;;  %v2298_v45 = vld [vmem:[%s2848_s0 + $0x138] sm:$0xff]  ;;  %v2329_v50 = vld [vmem:[%s2848_s0 + $0x168] sm:$0xff]  ;;  %v52_v60 = vld [vmem:[%s2848_s0 + $0x120] sm:$0xff] }
  0x25   :  { %1605 = vmatprep.subr.bf16.mxu0 %v2852_v5  ;;  %v27_v46 = vld [vmem:[%s2848_s0 + $0x58] sm:$0xff]  ;;  %v29_v51 = vld [vmem:[%s2848_s0 + $0x68] sm:$0xff]  ;;  %v40_v62 = vld [vmem:[%s2848_s0 + $0xc0] sm:$0xff] }
  0x26   :  { %797 = vperm.xlu0 %1944, %v2184_v24   ;;  %v2321_v49 = vld [vmem:[%s2848_s0 + $0x158] sm:$0xff]  ;;  %v65_v15 = vld [vmem:[%s2849_s1] ss:$2 sm:$0x3] }
  0x27   :  { %1949 = vset.pattern.permute.xlu1 %v2854_v2  ;;  %1927 = vmatpush1.bf16.msra.mxu1 %v1999_v23  ;;  %v63_v57 = vld [vmem:[%s2848_s0 + $0x178] sm:$0xff] }
  0x28   :  { %737 = vperm.xlu1 %1949, %v21_v22   ;;  %1606 = vmatpush1.bf16.msra.mxu0 %v2000_v25 }
  0x29   :  { %1912 = vmatprep.subr.bf16.mxu1 %v2852_v5  ;;  %1607 = vmatprep.subr.bf16.mxu0 %v2852_v5 }
  0x2a   :  { %805 = vperm.xlu0 %1944, %v2197_v26  }
  0x2b   :  { %1928 = vmatpush1.bf16.msra.mxu1 %v2000_v25 }
  0x2c   :  { %1950 = vset.pattern.permute.xlu1 %v2852_v5  ;;  %1608 = vmatpush1.bf16.msra.mxu0 %v2001_v27 }
  0x2d   :  { %210 = vperm.xlu1 %1950, %v44_v28   ;;  %1609 = vmatprep.subr.bf16.mxu0 %v2852_v5 }
  0x2e   :  { %1985 = vset.pattern.permute.xlu0 %v2852_v5  ;;  %1913 = vmatprep.subr.bf16.mxu1 %v2852_v5 }
  0x2f   :  { %70 = vperm.xlu0 %1985, %v2068_v1   ;;  %1929 = vmatpush1.bf16.msra.mxu1 %v2001_v27  ;;  %v316_v1 = vsub.s32 0, %v315_v61 }
  0x30   :  { %1610 = vmatpush1.bf16.msra.mxu0 %v2002_v29  ;;  %1914 = vmatprep.subr.bf16.mxu1 %v2852_v5 }
  0x31   :  { %1951 = vset.pattern.permute.xlu1 %v2854_v2  ;;  %1611 = vmatprep.subr.bf16.mxu0 %v2852_v5  ;;  %v2391_v25 = vrot.slane %v65_v15, %v316_v1 }
  0x32   :  { %829 = vperm.xlu1 %1951, %v44_v28  }
  0x33   :  { %75 = vperm.xlu0 %1985, %v2082_v4   ;;  %1930 = vmatpush1.bf16.msra.mxu1 %v2002_v29 }
  0x34   :  { %1612 = vmatpush1.bf16.msra.mxu0 %v2003_v30  ;;  %1915 = vmatprep.subr.bf16.mxu1 %v2852_v5 }
  0x35   :  { %1613 = vmatprep.subr.bf16.mxu0 %v2852_v5 }
  0x36   :  { %833 = vperm.xlu1 %1951, %v45_v31  }
  0x37   :  { %80 = vperm.xlu0 %1985, %v2063_v0   ;;  %1931 = vmatpush1.bf16.msra.mxu1 %v2003_v30 }
  0x38   :  { %1614 = vmatpush1.bf16.msra.mxu0 %v2004_v32  ;;  %1916 = vmatprep.subr.bf16.mxu1 %v2852_v5 }
  0x39   :  { %1615 = vmatprep.subr.bf16.mxu0 %v2852_v5 }
  0x3a   :  { %1952 = vset.pattern.permute.xlu1 %v2852_v5 }
  0x3b   :  { %205 = vperm.xlu0 %1985, %v2157_v19   ;;  %105 = vperm.xlu1 %1952, %v23_v33  }
  0x3c   :  { %1932 = vmatpush1.bf16.msra.mxu1 %v2004_v32  ;;  %1616 = vmatpush1.bf16.msra.mxu0 %v2005_v34 }
  0x3d   :  { %1917 = vmatprep.subr.bf16.mxu1 %v2852_v5  ;;  %1617 = vmatprep.subr.bf16.mxu0 %v2852_v5 }
  0x3f   :  { %90 = vperm.xlu0 %1985, %v2077_v3   ;;  %1953 = vset.pattern.permute.xlu1 %v2854_v2  ;;  %v1888_v3 = vld [vmem:[%s2849_s1 + $0x1] ss:$2 sm:$0x3] }
  0x40   :  { %745 = vperm.xlu1 %1953, %v23_v33   ;;  %1933 = vmatpush1.bf16.msra.mxu1 %v2005_v34  ;;  %v2363_v7 = vrot.slane %v1888_v3, %v316_v1 }
  0x41   :  { %1618 = vmatpush1.bf16.msra.mxu0 %v2006_v35  ;;  %1918 = vmatprep.subr.bf16.mxu1 %v2852_v5 }
  0x42   :  { %1619 = vmatprep.subr.bf16.mxu0 %v2852_v5 }
  0x43   :  { %215 = vperm.xlu0 %1985, %v45_v31  }
  0x44   :  { %1954 = vset.pattern.permute.xlu1 %v2852_v5  ;;  %1934 = vmatpush1.bf16.msra.mxu1 %v2006_v35 }
  0x45   :  { %220 = vperm.xlu1 %1954, %v46_v37   ;;  %1620 = vmatpush1.bf16.msra.mxu0 %v2007_v36 }
  0x46   :  { %1621 = vmatprep.subr.bf16.mxu0 %v2852_v5  ;;  %1919 = vmatprep.subr.bf16.mxu1 %v2852_v5 }
  0x47   :  { %100 = vperm.xlu0 %1985, %v2091_v6   ;;  %v320_v6 = vsub.s32 1, %v315_v61 }
  0x48   :  { %1935 = vmatpush1.bf16.msra.mxu1 %v2007_v36 }
  0x49   :  { %1955 = vset.pattern.permute.xlu1 %v2854_v2  ;;  %1622 = vmatpush1.bf16.msra.mxu0 %v2008_v38  ;;  %v2369_v10 = vrot.slane %v1888_v3, %v320_v6 }
  0x4a   :  { %837 = vperm.xlu1 %1955, %v46_v37   ;;  %1920 = vmatprep.subr.bf16.mxu1 %v2852_v5 }
  0x4b   :  { %225 = vperm.xlu0 %1985, %v47_v39  }
  0x4c   :  { %1936 = vmatpush1.bf16.msra.mxu1 %v2008_v38 }
  0x4e   :  { %841 = vperm.xlu1 %1955, %v47_v39  }
  0x4f   :  { %110 = vperm.xlu0 %1985, %v2101_v8  }
  0x52   :  { %1956 = vset.pattern.permute.xlu1 %v2852_v5 }
  0x53   :  { %235 = vperm.xlu0 %1985, %v49_v40   ;;  %115 = vperm.xlu1 %1956, %v25_v41  }
  0x57   :  { %120 = vperm.xlu0 %1985, %v2115_v11   ;;  %1957 = vset.pattern.permute.xlu1 %v2854_v2 }
  0x58   :  { %753 = vperm.xlu1 %1957, %v25_v41  }
  0x5b   :  { %245 = vperm.xlu0 %1985, %v51_v42  }
  0x5c   :  { %1958 = vset.pattern.permute.xlu1 %v2852_v5 }
  0x5d   :  { %230 = vperm.xlu1 %1958, %v48_v43  }
  0x5f   :  { %130 = vperm.xlu0 %1985, %v2124_v13   ;;  %v31_v13 = vld [vmem:[%s2848_s0 + $0x78] sm:$0xff] }
  0x61   :  { %1959 = vset.pattern.permute.xlu1 %v2854_v2 }
  0x62   :  { %845 = vperm.xlu1 %1959, %v48_v43  }
  0x63   :  { %255 = vperm.xlu0 %1985, %v2290_v44  }
  0x66   :  { %849 = vperm.xlu1 %1959, %v49_v40  }
  0x67   :  { %140 = vperm.xlu0 %1985, %v2139_v16  }
  0x6a   :  { %1960 = vset.pattern.permute.xlu1 %v2852_v5 }
  0x6b   :  { %265 = vperm.xlu0 %1985, %v2298_v45   ;;  %125 = vperm.xlu1 %1960, %v27_v46  }
  0x6f   :  { %150 = vperm.xlu0 %1985, %v2152_v18   ;;  %1961 = vset.pattern.permute.xlu1 %v2854_v2 }
  0x70   :  { %761 = vperm.xlu1 %1961, %v27_v46  }
  0x73   :  { %275 = vperm.xlu0 %1985, %v2310_v47  }
  0x74   :  { %1962 = vset.pattern.permute.xlu1 %v2852_v5 }
  0x75   :  { %240 = vperm.xlu1 %1962, %v50_v48  }
  0x77   :  { %160 = vperm.xlu0 %1985, %v2169_v21  }
  0x79   :  { %1963 = vset.pattern.permute.xlu1 %v2854_v2 }
  0x7a   :  { %853 = vperm.xlu1 %1963, %v50_v48  }
  0x7b   :  { %285 = vperm.xlu0 %1985, %v2321_v49  }
  0x7e   :  { %857 = vperm.xlu1 %1963, %v51_v42  }
  0x7f   :  { %170 = vperm.xlu0 %1985, %v2184_v24  }
  0x81   :  { %v718_v52 = vpop.permute.xlu1 %717  ;;  %v726_v53 = vpop.permute.xlu0 %725 }
  0x82   :  { %1964 = vset.pattern.permute.xlu1 %v2852_v5  ;;  %v923_v11 = vsub.f32 %v718_v52, %v2363_v7  ;;  %v927_v12 = vsub.f32 %v726_v53, %v2363_v7  ;;  %v928_v14 = vsub.f32 %v726_v53, %v2369_v10  ;;  %v924_v18 = vsub.f32 %v718_v52, %v2369_v10  ;;  %v54_v52 = vld [vmem:[%s2848_s0 + $0x130] sm:$0xff] }
  0x83   :  { %295 = vperm.xlu0 %1985, %v2329_v50   ;;  %135 = vperm.xlu1 %1964, %v29_v51  }
  0x84   :  { %v1021_v23 = vand.u32 2147483647, %v923_v11  ;;  %v1025_v24 = vand.u32 2147483647, %v927_v12  ;;  %v1026_v27 = vand.u32 2147483647, %v928_v14 }
  0x85   :  { %v722_v54 = vpop.permute.xlu1 %721  ;;  %v734_v55 = vpop.permute.xlu0 %733  ;;  %v1022_v31 = vand.u32 2147483647, %v924_v18 }
  0x86   :  { %v925_v19 = vsub.f32 %v722_v54, %v2363_v7  ;;  %v926_v20 = vsub.f32 %v722_v54, %v2369_v10  ;;  %v931_v21 = vsub.f32 %v734_v55, %v2363_v7  ;;  %v932_v22 = vsub.f32 %v734_v55, %v2369_v10 }
  0x87   :  { %180 = vperm.xlu0 %1985, %v2197_v26   ;;  %1965 = vset.pattern.permute.xlu1 %v2854_v2  ;;  %v2393_v26 = vrot.slane %v65_v15, %v320_v6  ;;  %v1119_v38 = vsub.f32 1.0, %v1021_v23  ;;  %v1123_v39 = vsub.f32 1.0, %v1025_v24  ;;  %v1124_v42 = vsub.f32 1.0, %v1026_v27 }
  0x88   :  { %769 = vperm.xlu1 %1965, %v29_v51   ;;  %v1023_v32 = vand.u32 2147483647, %v925_v19  ;;  %v1024_v33 = vand.u32 2147483647, %v926_v20  ;;  %v1029_v35 = vand.u32 2147483647, %v931_v21 }
  0x89   :  { %v2341_v58 = vpop.permute.xlu0 %741  ;;  %v1030_v36 = vand.u32 2147483647, %v932_v22  ;;  %v1120_v53 = vsub.f32 1.0, %v1022_v31  ;;  %v2424_v61 = vmax.f32 %v1123_v39, 0.0  ;;  %v2427_v3 = vmax.f32 %v1124_v42, 0.0 }
  0x8a   :  { %v2343_v59 = vpop.permute.xlu1 %85  ;;  %v935_v28 = vsub.f32 %v2341_v58, %v2363_v7  ;;  %v936_v34 = vsub.f32 %v2341_v58, %v2369_v10  ;;  %v1121_v46 = vsub.f32 1.0, %v1023_v32  ;;  %v1122_v54 = vsub.f32 1.0, %v1024_v33 }
  0x8b   :  { %305 = vperm.xlu0 %1985, %v63_v57   ;;  %v330_v40 = vsub.f32 %v2343_v59, %v2391_v25  ;;  %v331_v41 = vsub.f32 %v2343_v59, %v2393_v26  ;;  %v1127_v55 = vsub.f32 1.0, %v1029_v35  ;;  %v1128_v56 = vsub.f32 1.0, %v1030_v36  ;;  %v64_v59 = vld [vmem:[%s2848_s0 + $0x180] sm:$0xff] }
  0x8c   :  { %1966 = vset.pattern.permute.xlu1 %v2852_v5  ;;  %v1033_v43 = vand.u32 2147483647, %v935_v28  ;;  %v1034_v48 = vand.u32 2147483647, %v936_v34  ;;  %v2437_v15 = vmax.f32 %v1120_v53, 0.0  ;;  %v2439_v18 = vmax.f32 %v1122_v54, 0.0 }
  0x8d   :  { %250 = vperm.xlu1 %1966, %v52_v60   ;;  %v2352_v63 = vpop.permute.xlu0 %749  ;;  %v429_v1 = vand.u32 2147483647, %v331_v41  ;;  %v2441_v19 = vmax.f32 %v1127_v55, 0.0  ;;  %v2443_v20 = vmax.f32 %v1128_v56, 0.0 }
  0x8e   :  { %v1131_v6 = vsub.f32 1.0, %v1033_v43  ;;  %v1132_v14 = vsub.f32 1.0, %v1034_v48 }
  0x8f   :  { %v2354_v0 = vpop.permute.xlu1 %729  ;;  %190 = vperm.xlu0 %1985, %v40_v62   ;;  %v527_v27 = vsub.f32 1.0, %v429_v1 }
  0x90   :  { %v930_v37 = vsub.f32 %v2354_v0, %v2369_v10  ;;  %v929_v57 = vsub.f32 %v2354_v0, %v2363_v7  ;;  %v2449_v31 = vmax.f32 %v1131_v6, 0.0  ;;  %v2456_v36 = vmax.f32 %v1132_v14, 0.0 }
  0x91   :  { %1967 = vset.pattern.permute.xlu1 %v2854_v2  ;;  %v2360_v4 = vpop.permute.xlu0 %757  ;;  %v625_v55 = vmax.f32 %v527_v27, 0.0 }
  0x92   :  { %861 = vperm.xlu1 %1967, %v52_v60   ;;  %v1028_v58 = vand.u32 2147483647, %v930_v37  ;;  %v2422_v60 = vmax.f32 %v1119_v38, 0.0  ;;  %v1027_v21 = vand.u32 2147483647, %v929_v57 }
  0x93   :  { %1990 = vset.pattern.permute.xlu0 %v2854_v2 }
  0x94   :  { %v2365_v8 = vpop.permute.xlu1 %200  ;;  %813 = vperm.xlu0 %1990, %v40_v62   ;;  %v428_v62 = vand.u32 2147483647, %v330_v40  ;;  %v1126_v22 = vsub.f32 1.0, %v1028_v58  ;;  %v1125_v40 = vsub.f32 1.0, %v1027_v21 }
  0x95   :  { %v2367_v9 = vpop.permute.xlu0 %765  ;;  %v376_v0 = vsub.f32 %v2365_v8, %v2391_v25  ;;  %v377_v11 = vsub.f32 %v2365_v8, %v2393_v26  ;;  %v939_v8 = vsub.f32 %v2352_v63, %v2363_v7 }
  0x96   :  { %865 = vperm.xlu1 %1967, %v2290_v44   ;;  %v526_v24 = vsub.f32 1.0, %v428_v62  ;;  %v1224_v41 = vmax.f32 %v1126_v22, 0.0  ;;  %v1223_v6 = vmax.f32 %v1125_v40, 0.0 }
  0x97   :  { %v474_v32 = vand.u32 2147483647, %v376_v0  ;;  %v475_v33 = vand.u32 2147483647, %v377_v11 }
  0x98   :  { %909 = vperm.xlu0 %1990, %v64_v59   ;;  %v624_v43 = vmax.f32 %v526_v24, 0.0  ;;  %v2473_v14 = vmul.f32 %v1224_v41, %v625_v55  ;;  %v33_v24 = vld [vmem:[%s2848_s0 + $0x88] sm:$0xff] }
  0x99   :  { %v2381_v16 = vpop.permute.xlu1 %821  ;;  %v2383_v17 = vpop.permute.xlu0 %773  ;;  %v573_v57 = vsub.f32 1.0, %v475_v33 }
  0x9a   :  { %1968 = vset.pattern.permute.xlu1 %v2852_v5  ;;  %v975_v28 = vsub.f32 %v2381_v16, %v2363_v7  ;;  %v976_v34 = vsub.f32 %v2381_v16, %v2369_v10 }
  0x9b   :  { %145 = vperm.xlu1 %1968, %v31_v13  }
  0x9c   :  { %v1073_v48 = vand.u32 2147483647, %v975_v28  ;;  %v1074_v56 = vand.u32 2147483647, %v976_v34 }
  0x9d   :  { %v2397_v29 = vpop.permute.xlu1 %825  ;;  %v2399_v30 = vpop.permute.xlu0 %781 }
  0x9e   :  { %2860 = vst [vmem:[#allocation5_spill] sm:$0xff] %v2399_v30  ;;  %v977_v37 = vsub.f32 %v2397_v29, %v2363_v7  ;;  %v978_v38 = vsub.f32 %v2397_v29, %v2369_v10  ;;  %v572_v29 = vsub.f32 1.0, %v474_v32  ;;  %v671_v32 = vmax.f32 %v573_v57, 0.0 }
  0x9f   :  { %1969 = vset.pattern.permute.xlu1 %v2854_v2 }
  0xa0   :  { %777 = vperm.xlu1 %1969, %v31_v13   ;;  %v2435_v13 = vmax.f32 %v1121_v46, 0.0  ;;  %v2466_v46 = vand.u32 2147483647, %v939_v8  ;;  %v1075_v58 = vand.u32 2147483647, %v977_v37  ;;  %v670_v27 = vmax.f32 %v572_v29, 0.0 }
  0xa1   :  { %v2410_v44 = vpop.permute.xlu0 %789  ;;  %v1076_v59 = vand.u32 2147483647, %v978_v38  ;;  %v1172_v38 = vsub.f32 1.0, %v1074_v56 }
  0xa2   :  { %2861 = vst [vmem:[#allocation6_spill] sm:$0xff] %v2410_v44  ;;  %v2412_v51 = vpop.permute.xlu1 %95  ;;  %v1173_v33 = vsub.f32 1.0, %v1075_v58 }
  0xa3   :  { %v334_v39 = vsub.f32 %v2412_v51, %v2391_v25  ;;  %v335_v53 = vsub.f32 %v2412_v51, %v2393_v26  ;;  %v1171_v51 = vsub.f32 1.0, %v1073_v48 }
  0xa4   :  { %1970 = vset.pattern.permute.xlu1 %v2852_v5  ;;  %v2489_v56 = vmax.f32 %v1173_v33, 0.0 }
  0xa5   :  { %260 = vperm.xlu1 %1970, %v54_v52   ;;  %v2433_v12 = vpop.permute.xlu0 %797  ;;  %v432_v62 = vand.u32 2147483647, %v334_v39  ;;  %v433_v21 = vand.u32 2147483647, %v335_v53  ;;  %v1174_v39 = vsub.f32 1.0, %v1076_v59  ;;  %v1269_v48 = vmax.f32 %v1171_v51, 0.0 }
  0xa6   :  { %2862 = vst [vmem:[#allocation7_spill] sm:$0xff] %v2433_v12 }
  0xa7   :  { %v738_v23 = vpop.permute.xlu1 %737  ;;  %v530_v34 = vsub.f32 1.0, %v432_v62  ;;  %v531_v53 = vsub.f32 1.0, %v433_v21  ;;  %v2493_v21 = vmax.f32 %v1174_v39, 0.0  ;;  %v56_v39 = vld [vmem:[%s2848_s0 + $0x140] sm:$0xff] }
  0xa8   :  { %v933_v16 = vsub.f32 %v738_v23, %v2363_v7  ;;  %v934_v42 = vsub.f32 %v738_v23, %v2369_v10 }
  0xa9   :  { %1971 = vset.pattern.permute.xlu1 %v2854_v2  ;;  %v2454_v35 = vpop.permute.xlu0 %805 }
  0xaa   :  { %2863 = vst [vmem:[#allocation8_spill] sm:$0xff] %v2454_v35  ;;  %869 = vperm.xlu1 %1971, %v54_v52   ;;  %v1031_v0 = vand.u32 2147483647, %v933_v16  ;;  %v1032_v11 = vand.u32 2147483647, %v934_v42  ;;  %v1270_v52 = vmax.f32 %v1172_v38, 0.0 }
  0xac   :  { %v211_v54 = vpop.permute.xlu1 %210  ;;  %v1129_v40 = vsub.f32 1.0, %v1031_v0  ;;  %v1130_v41 = vsub.f32 1.0, %v1032_v11 }
  0xad   :  { %v380_v22 = vsub.f32 %v211_v54, %v2391_v25  ;;  %v381_v8 = vsub.f32 %v211_v54, %v2393_v26 }
  0xae   :  { %v71_v1 = vpop.permute.xlu0 %70  ;;  %873 = vperm.xlu1 %1971, %v2298_v45   ;;  %v1228_v51 = vmax.f32 %v1130_v41, 0.0 }
  0xaf   :  { %v324_v23 = vsub.f32 %v71_v1, %v2391_v25  ;;  %v325_v45 = vsub.f32 %v71_v1, %v2393_v26  ;;  %v478_v54 = vand.u32 2147483647, %v380_v22  ;;  %v479_v29 = vand.u32 2147483647, %v381_v8 }
  0xb0   :  { %v2487_v1 = vmul.f32 %v1223_v6, %v624_v43  ;;  %v629_v22 = vmax.f32 %v531_v53, 0.0  ;;  %v2503_v53 = vmul.f32 %v1270_v52, %v671_v32 }
  0xb1   :  { %v830_v28 = vpop.permute.xlu1 %829  ;;  %v422_v55 = vand.u32 2147483647, %v324_v23  ;;  %v423_v57 = vand.u32 2147483647, %v325_v45  ;;  %v576_v6 = vsub.f32 1.0, %v478_v54  ;;  %v577_v45 = vsub.f32 1.0, %v479_v29 }
  0xb2   :  { %v76_v37 = vpop.permute.xlu0 %75  ;;  %1972 = vset.pattern.permute.xlu1 %v2852_v5  ;;  %v980_v59 = vsub.f32 %v830_v28, %v2369_v10  ;;  %v1227_v5 = vmax.f32 %v1129_v40, 0.0  ;;  %v979_v8 = vsub.f32 %v830_v28, %v2363_v7  ;;  %v2506_v28 = vmul.f32 %v1269_v48, %v670_v27 }
  0xb3   :  { %v326_v16 = vsub.f32 %v76_v37, %v2391_v25  ;;  %v327_v42 = vsub.f32 %v76_v37, %v2393_v26  ;;  %155 = vperm.xlu1 %1972, %v33_v24   ;;  %v628_v37 = vmax.f32 %v530_v34, 0.0  ;;  %v520_v23 = vsub.f32 1.0, %v422_v55 }
  0xb4   :  { %v521_v33 = vsub.f32 1.0, %v423_v57  ;;  %v2508_v54 = vmul.f32 %v1228_v51, %v629_v22  ;;  %v1077_v57 = vand.u32 2147483647, %v979_v8 }
  0xb5   :  { %v424_v58 = vand.u32 2147483647, %v326_v16  ;;  %v2485_v62 = vpop.permute.xlu1 %833  ;;  %v425_v0 = vand.u32 2147483647, %v327_v42  ;;  %v1078_v42 = vand.u32 2147483647, %v980_v59  ;;  %v2510_v55 = vmul.f32 %v1227_v5, %v628_v37 }
  0xb6   :  { %v81_v11 = vpop.permute.xlu0 %80  ;;  %v618_v29 = vmax.f32 %v520_v23, 0.0  ;;  %v619_v35 = vmax.f32 %v521_v33, 0.0  ;;  %v981_v5 = vsub.f32 %v2485_v62, %v2363_v7  ;;  %v982_v37 = vsub.f32 %v2485_v62, %v2369_v10 }
  0xb7   :  { %1973 = vset.pattern.permute.xlu1 %v2854_v2  ;;  %v522_v43 = vsub.f32 1.0, %v424_v58  ;;  %v328_v16 = vsub.f32 %v81_v11, %v2391_v25  ;;  %v523_v38 = vsub.f32 1.0, %v425_v0  ;;  %v329_v34 = vsub.f32 %v81_v11, %v2393_v26 }
  0xb8   :  { %785 = vperm.xlu1 %1973, %v33_v24   ;;  %v2864_v0 = vmov 0   ;;  %v2513_v11 = vmax.f32 %v576_v6, 0.0  ;;  %v675_v2 = vmax.f32 %v577_v45, 0.0  ;;  %v1176_v32 = vsub.f32 1.0, %v1078_v42 }
  0xb9   :  { %v620_v58 = vmax.f32 %v522_v43, 0.0  ;;  %v427_v59 = vand.u32 2147483647, %v329_v34  ;;  %v426_v52 = vand.u32 2147483647, %v328_v16  ;;  %v621_v12 = vmax.f32 %v523_v38, 0.0 }
  0xba   :  { %v206_v40 = vpop.permute.xlu0 %205  ;;  %v2498_v41 = vpop.permute.xlu1 %105  ;;  %v1315_v43 = vmul.f32 %v2422_v60, %v618_v29  ;;  %v1175_v6 = vsub.f32 1.0, %v1077_v57  ;;  %v1079_v57 = vand.u32 2147483647, %v981_v5 }
  0xbb   :  { %v378_v24 = vsub.f32 %v206_v40, %v2391_v25  ;;  %v525_v27 = vsub.f32 1.0, %v427_v59  ;;  %v379_v48 = vsub.f32 %v206_v40, %v2393_v26  ;;  %v1317_v45 = vmul.f32 %v2435_v13, %v620_v58 }
  0xbc   :  { %1974 = vset.pattern.permute.xlu1 %v2864_v0  ;;  %v524_v16 = vsub.f32 1.0, %v426_v52  ;;  %v338_v42 = vsub.f32 %v2498_v41, %v2391_v25  ;;  %v2865_v40 = vmov 1   ;;  %v1316_v59 = vmul.f32 %v2437_v15, %v619_v35 }
  0xbd   :  { %270 = vperm.xlu1 %1974, %v56_v39   ;;  %v476_v22 = vand.u32 2147483647, %v378_v24  ;;  %v623_v33 = vmax.f32 %v525_v27, 0.0  ;;  %v477_v24 = vand.u32 2147483647, %v379_v48  ;;  %v1318_v60 = vmul.f32 %v2439_v18, %v621_v12 }
  0xbe   :  { %v91_v51 = vpop.permute.xlu0 %90  ;;  %v1274_v13 = vmax.f32 %v1176_v32, 0.0  ;;  %v1080_v58 = vand.u32 2147483647, %v982_v37  ;;  %v339_v27 = vsub.f32 %v2498_v41, %v2393_v26  ;;  %v1413_v44 = vpack.c.bf16 %v1317_v45, %v1315_v43 }
  0xbf   :  { %v333_v23 = vsub.f32 %v91_v51, %v2393_v26  ;;  %v2521_v8 = vpop.permute.xlu1 %745  ;;  %v332_v38 = vsub.f32 %v91_v51, %v2391_v25  ;;  %v1320_v62 = vmul.f32 %v2427_v3, %v623_v33  ;;  %v574_v52 = vsub.f32 1.0, %v476_v22 }
  0xc0   :  { %v622_v3 = vmax.f32 %v524_v16, 0.0  ;;  %v436_v48 = vand.u32 2147483647, %v338_v42  ;;  %v575_v12 = vsub.f32 1.0, %v477_v24  ;;  %v937_v18 = vsub.f32 %v2521_v8, %v2363_v7 }
  0xc1   :  { %v431_v34 = vand.u32 2147483647, %v333_v23  ;;  %1975 = vset.pattern.permute.xlu1 %v2865_v40  ;;  %v1414_v23 = vpack.c.bf16 %v1318_v60, %v1316_v59  ;;  %v430_v33 = vand.u32 2147483647, %v332_v38  ;;  %v2542_v32 = vmax.f32 %v1175_v6, 0.0 }
  0xc2   :  { %v216_v29 = vpop.permute.xlu0 %215  ;;  %877 = vperm.xlu1 %1975, %v56_v39   ;;  %v1416_v39 = vpack.c.bf16 %v2473_v14, %v1320_v62  ;;  %v672_v5 = vmax.f32 %v574_v52, 0.0  ;;  %v2544_v22 = vmul.f32 %v1274_v13, %v675_v2  ;;  %v1177_v43 = vsub.f32 1.0, %v1079_v57  ;;  %v35_v14 = vld [vmem:[%s2848_s0 + $0x98] sm:$0xff] }
  0xc3   :  { %v529_v51 = vsub.f32 1.0, %v431_v34  ;;  %v383_v15 = vsub.f32 %v216_v29, %v2393_v26  ;;  %1623 = vmatprep.mubr.bf16.mxu0 %v1414_v23  ;;  %v382_v35 = vsub.f32 %v216_v29, %v2391_v25  ;;  %v1178_v45 = vsub.f32 1.0, %v1080_v58 }
  0xc4   :  { %v2534_v30 = vpop.permute.xlu1 %220  ;;  %1624 = vmatmul.mubr.bf16.vlgmr.msra.gmra.mrb[0].mxu0 %v1413_v44  ;;  %v2546_v16 = vand.u32 2147483647, %v339_v27  ;;  %v534_v38 = vsub.f32 1.0, %v436_v48  ;;  %v528_v34 = vsub.f32 1.0, %v430_v33  ;;  %v1319_v2 = vmul.f32 %v2424_v61, %v622_v3 }
  0xc5   :  { %v481_v37 = vand.u32 2147483647, %v383_v15  ;;  %v627_v42 = vmax.f32 %v529_v51, 0.0  ;;  %1631 = vmatprep.mubr.bf16.mxu0 %v1416_v39  ;;  %v673_v62 = vmax.f32 %v575_v12, 0.0  ;;  %v1035_v24 = vand.u32 2147483647, %v937_v18 }
  0xc6   :  { %v101_v41 = vpop.permute.xlu0 %100  ;;  %881 = vperm.xlu1 %1975, %v2310_v47   ;;  %v938_v47 = vsub.f32 %v2521_v8, %v2369_v10  ;;  %v480_v59 = vand.u32 2147483647, %v382_v35  ;;  %v1369_v60 = vmul.f32 %v2489_v56, %v672_v5  ;;  %v1275_v58 = vmax.f32 %v1177_v43, 0.0 }
  0xc7   :  { %v337_v44 = vsub.f32 %v101_v41, %v2393_v26  ;;  %v579_v29 = vsub.f32 1.0, %v481_v37  ;;  %v336_v13 = vsub.f32 %v101_v41, %v2391_v25  ;;  %v1276_v8 = vmax.f32 %v1178_v45, 0.0 }
  0xc8   :  { %v535_v52 = vsub.f32 1.0, %v2546_v16  ;;  %v1324_v27 = vmul.f32 %v2443_v20, %v627_v42  ;;  %v2562_v51 = vmax.f32 %v534_v38, 0.0  ;;  %v626_v61 = vmax.f32 %v528_v34, 0.0 }
  0xc9   :  { %v2554_v6 = vpop.permute.xlu1 %837  ;;  %v435_v57 = vand.u32 2147483647, %v337_v44  ;;  %v1036_v23 = vand.u32 2147483647, %v938_v47  ;;  %v384_v3 = vsub.f32 %v2534_v30, %v2391_v25  ;;  %v1133_v56 = vsub.f32 1.0, %v1035_v24 }
  0xca   :  { %1976 = vset.pattern.permute.xlu1 %v2864_v0  ;;  %v578_v33 = vsub.f32 1.0, %v480_v59  ;;  %v1370_v15 = vmul.f32 %v2493_v21, %v673_v62  ;;  %v1415_v12 = vpack.c.bf16 %v2487_v1, %v1319_v2  ;;  %v677_v18 = vmax.f32 %v579_v29, 0.0  ;;  %v226_v20 = vpop.permute.xlu0 %225 }
  0xcb   :  { %165 = vperm.xlu1 %1976, %v35_v14   ;;  %v434_v35 = vand.u32 2147483647, %v336_v13  ;;  %v533_v39 = vsub.f32 1.0, %v435_v57  ;;  %v1439_v41 = vpack.c.bf16 %v1369_v60, %v2506_v28  ;;  %v386_v37 = vsub.f32 %v226_v20, %v2391_v25 }
  0xcc   :  { %v1440_v5 = vpack.c.bf16 %v1370_v15, %v2503_v53  ;;  %1632 = vmatmul.mubr.bf16.gmra.mrb[4].mxu0 %v1415_v12  ;;  %v387_v43 = vsub.f32 %v226_v20, %v2393_v26  ;;  %v1418_v45 = vpack.c.bf16 %v2508_v54, %v1324_v27  ;;  %v1134_v21 = vsub.f32 1.0, %v1036_v23 }
  0xcd   :  { %v842_v48 = vpop.permute.xlu1 %841  ;;  %v385_v1 = vsub.f32 %v2534_v30, %v2393_v26  ;;  %v2576_v16 = vand.u32 2147483647, %v384_v3  ;;  %v983_v28 = vsub.f32 %v2554_v6, %v2363_v7  ;;  %v984_v53 = vsub.f32 %v2554_v6, %v2369_v10 }
  0xce   :  { %1727 = vmatprep.mubr.bf16.mxu1 %v1440_v5  ;;  %v484_v42 = vand.u32 2147483647, %v386_v37  ;;  %1639 = vmatprep.mubr.bf16.mxu0 %v1418_v45  ;;  %v985_v38 = vsub.f32 %v842_v48, %v2363_v7  ;;  %v986_v54 = vsub.f32 %v842_v48, %v2369_v10  ;;  %v1323_v30 = vmul.f32 %v2441_v19, %v626_v61 }
  0xcf   :  { %1977 = vset.pattern.permute.xlu1 %v2865_v40  ;;  %v676_v47 = vmax.f32 %v578_v33, 0.0  ;;  %v1374_v44 = vmul.f32 %v1276_v8, %v677_v18  ;;  %1728 = vmatmul.mubr.bf16.vlgmr.msra.gmra.mrb[0].mxu1 %v1439_v41  ;;  %v485_v2 = vand.u32 2147483647, %v387_v43  ;;  %v532_v62 = vsub.f32 1.0, %v434_v35 }
  0xd0   :  { %793 = vperm.xlu1 %1977, %v35_v14   ;;  %v58_v14 = vld [vmem:[%s2848_s0 + $0x150] sm:$0xff]  ;;  %v631_v6 = vmax.f32 %v533_v39, 0.0  ;;  %v1083_v24 = vand.u32 2147483647, %v985_v38  ;;  %v1084_v59 = vand.u32 2147483647, %v986_v54  ;;  %v1417_v35 = vpack.c.bf16 %v2510_v55, %v1323_v30 }
  0xd1   :  { %v633_v60 = vmax.f32 %v535_v52, 0.0  ;;  %v1231_v29 = vmax.f32 %v1133_v56, 0.0  ;;  %v1232_v13 = vmax.f32 %v1134_v21, 0.0  ;;  %v483_v57 = vand.u32 2147483647, %v385_v1  ;;  %v111_v52 = vpop.permute.xlu0 %110 }
  0xd2   :  { %v2584_v34 = vpop.permute.xlu1 %115  ;;  %v580_v19 = vsub.f32 1.0, %v2576_v16  ;;  %v1081_v27 = vand.u32 2147483647, %v983_v28  ;;  %v1082_v8 = vand.u32 2147483647, %v984_v53  ;;  %v582_v61 = vsub.f32 1.0, %v484_v42 }
  0xd3   :  { %v1373_v23 = vmul.f32 %v1275_v58, %v676_v47  ;;  %v583_v3 = vsub.f32 1.0, %v485_v2  ;;  %v1181_v48 = vsub.f32 1.0, %v1083_v24  ;;  %v1182_v33 = vsub.f32 1.0, %v1084_v59 }
  0xd4   :  { %1978 = vset.pattern.permute.xlu1 %v2864_v0  ;;  %v630_v12 = vmax.f32 %v532_v62, 0.0  ;;  %v1328_v18 = vmul.f32 %v2456_v36, %v631_v6  ;;  %v1442_v56 = vpack.c.bf16 %v1374_v44, %v2544_v22  ;;  %v1330_v39 = vmul.f32 %v1232_v13, %v633_v60  ;;  %1640 = vmatmul.mubr.bf16.gmra.mrb[8].mxu0 %v1417_v35 }
  0xd5   :  { %280 = vperm.xlu1 %1978, %v58_v14   ;;  %v581_v41 = vsub.f32 1.0, %v483_v57  ;;  %v340_v20 = vsub.f32 %v111_v52, %v2391_v25  ;;  %v1371_v5 = vmul.f32 %v2542_v32, %v2513_v11  ;;  %v1179_v58 = vsub.f32 1.0, %v1081_v27 }
  0xd6   :  { %v1180_v37 = vsub.f32 1.0, %v1082_v8  ;;  %v680_v43 = vmax.f32 %v582_v61, 0.0  ;;  %v341_v45 = vsub.f32 %v111_v52, %v2393_v26  ;;  %1735 = vmatprep.mubr.bf16.mxu1 %v1442_v56  ;;  %v681_v36 = vmax.f32 %v583_v3, 0.0  ;;  %v236_v56 = vpop.permute.xlu0 %235 }
  0xd7   :  { %v754_v15 = vpop.permute.xlu1 %753  ;;  %v1279_v21 = vmax.f32 %v1181_v48, 0.0  ;;  %v1280_v1 = vmax.f32 %v1182_v33, 0.0  ;;  %v1441_v22 = vpack.c.bf16 %v1373_v23, %v1371_v5  ;;  %v1327_v55 = vmul.f32 %v2449_v31, %v630_v12 }
  0xd8   :  { %v342_v16 = vsub.f32 %v2584_v34, %v2391_v25  ;;  %v343_v11 = vsub.f32 %v2584_v34, %v2393_v26  ;;  %v1420_v32 = vpack.c.bf16 %v1330_v39, %v1328_v18  ;;  %v2866_v53 = vsub.f32 %v2352_v63, %v2369_v10 }
  0xd9   :  { %1979 = vset.pattern.permute.xlu1 %v2865_v40  ;;  %v1329_v38 = vmul.f32 %v1231_v29, %v2562_v51  ;;  %v438_v54 = vand.u32 2147483647, %v340_v20  ;;  %1736 = vmatmul.mubr.bf16.gmra.mrb[4].mxu1 %v1441_v22  ;;  %v941_v31 = vsub.f32 %v754_v15, %v2363_v7  ;;  %v1277_v30 = vmax.f32 %v1179_v58, 0.0 }
  0xda   :  { %885 = vperm.xlu1 %1979, %v58_v14   ;;  %v1038_v42 = vand.u32 2147483647, %v2866_v53  ;;  %v1278_v47 = vmax.f32 %v1180_v37, 0.0  ;;  %v439_v44 = vand.u32 2147483647, %v341_v45  ;;  %1647 = vmatprep.mubr.bf16.mxu0 %v1420_v32  ;;  %v942_v34 = vsub.f32 %v754_v15, %v2369_v10 }
  0xdb   :  { %v678_v2 = vmax.f32 %v580_v19, 0.0  ;;  %v679_v14 = vmax.f32 %v581_v41, 0.0  ;;  %v1377_v62 = vmul.f32 %v1279_v21, %v680_v43  ;;  %v1378_v6 = vmul.f32 %v1280_v1, %v681_v36  ;;  %v37_v19 = vld [vmem:[%s2848_s0 + $0xa8] sm:$0xff] }
  0xdc   :  { %v2605_v28 = vpop.permute.xlu1 %230  ;;  %v440_v24 = vand.u32 2147483647, %v342_v16  ;;  %v441_v59 = vand.u32 2147483647, %v343_v11  ;;  %v1039_v63 = vand.u32 2147483647, %v941_v31  ;;  %v1419_v60 = vpack.c.bf16 %v1329_v38, %v1327_v55 }
  0xdd   :  { %v1135_v51 = vsub.f32 1.0, %v2466_v46  ;;  %v1136_v29 = vsub.f32 1.0, %v1038_v42  ;;  %v536_v13 = vsub.f32 1.0, %v438_v54  ;;  %v1040_v57 = vand.u32 2147483647, %v942_v34  ;;  %v60_v54 = vld [vmem:[%s2848_s0 + $0x160] sm:$0xff]  ;;  %v121_v34 = vpop.permute.xlu0 %120 }
  0xde   :  { %889 = vperm.xlu1 %1979, %v2321_v49   ;;  %v1375_v8 = vmul.f32 %v1277_v30, %v678_v2  ;;  %v1376_v61 = vmul.f32 %v1278_v47, %v679_v14  ;;  %v537_v23 = vsub.f32 1.0, %v439_v44  ;;  %v1137_v3 = vsub.f32 1.0, %v1039_v63  ;;  %1648 = vmatmul.mubr.bf16.gmra.mrb[12].mxu0 %v1419_v60 }
  0xdf   :  { %v1138_v48 = vsub.f32 1.0, %v1040_v57  ;;  %v538_v33 = vsub.f32 1.0, %v440_v24  ;;  %v539_v15 = vsub.f32 1.0, %v441_v59  ;;  %v1233_v46 = vmax.f32 %v1135_v51, 0.0 }
  0xe0   :  { %v1444_v12 = vpack.c.bf16 %v1378_v6, %v1376_v61  ;;  %v1443_v49 = vpack.c.bf16 %v1377_v62, %v1375_v8  ;;  %v1234_v18 = vmax.f32 %v1136_v29, 0.0  ;;  %v634_v52 = vmax.f32 %v536_v13, 0.0 }
  0xe1   :  { %v846_v27 = vpop.permute.xlu1 %845  ;;  %v635_v39 = vmax.f32 %v537_v23, 0.0  ;;  %v390_v41 = vsub.f32 %v236_v56, %v2391_v25  ;;  %v1235_v20 = vmax.f32 %v1137_v3, 0.0  ;;  %v1236_v5 = vmax.f32 %v1138_v48, 0.0 }
  0xe2   :  { %1980 = vset.pattern.permute.xlu1 %v2864_v0  ;;  %1743 = vmatprep.mubr.bf16.mxu1 %v1444_v12  ;;  %v391_v58 = vsub.f32 %v236_v56, %v2393_v26  ;;  %v636_v37 = vmax.f32 %v538_v33, 0.0  ;;  %v637_v43 = vmax.f32 %v539_v15, 0.0  ;;  %v1331_v45 = vmul.f32 %v1233_v46, %v634_v52 }
  0xe3   :  { %175 = vperm.xlu1 %1980, %v37_v19   ;;  %1744 = vmatmul.mubr.bf16.gmra.mrb[8].mxu1 %v1443_v49  ;;  %v987_v36 = vsub.f32 %v846_v27, %v2363_v7  ;;  %v988_v21 = vsub.f32 %v846_v27, %v2369_v10  ;;  %v1332_v1 = vmul.f32 %v1234_v18, %v635_v39  ;;  %v488_v22 = vand.u32 2147483647, %v390_v41 }
  0xe4   :  { %v1333_v55 = vmul.f32 %v1235_v20, %v636_v37  ;;  %v1334_v16 = vmul.f32 %v1236_v5, %v637_v43  ;;  %v489_v32 = vand.u32 2147483647, %v391_v58  ;;  %v388_v53 = vsub.f32 %v2605_v28, %v2391_v25 }
  0xe5   :  { %v850_v35 = vpop.permute.xlu1 %849  ;;  %v389_v42 = vsub.f32 %v2605_v28, %v2393_v26  ;;  %v943_v38 = vsub.f32 %v2360_v4, %v2363_v7  ;;  %v944_v31 = vsub.f32 %v2360_v4, %v2369_v10  ;;  %v1085_v30 = vand.u32 2147483647, %v987_v36 }
  0xe6   :  { %v1086_v47 = vand.u32 2147483647, %v988_v21  ;;  %v586_v44 = vsub.f32 1.0, %v488_v22  ;;  %v1422_v2 = vpack.c.bf16 %v1334_v16, %v1332_v1  ;;  %v1421_v14 = vpack.c.bf16 %v1333_v55, %v1331_v45 }
  0xe7   :  { %1981 = vset.pattern.permute.xlu1 %v2865_v40  ;;  %v587_v62 = vsub.f32 1.0, %v489_v32  ;;  %v345_v28 = vsub.f32 %v121_v34, %v2393_v26  ;;  %v486_v6 = vand.u32 2147483647, %v388_v53  ;;  %v487_v24 = vand.u32 2147483647, %v389_v42 }
  0xe8   :  { %801 = vperm.xlu1 %1981, %v37_v19   ;;  %v1041_v63 = vand.u32 2147483647, %v943_v38  ;;  %1655 = vmatprep.mubr.bf16.mxu0 %v1422_v2  ;;  %v989_v60 = vsub.f32 %v850_v35, %v2363_v7  ;;  %v990_v4 = vsub.f32 %v850_v35, %v2369_v10  ;;  %v1042_v51 = vand.u32 2147483647, %v944_v31  ;;  %v39_v38 = vld [vmem:[%s2848_s0 + $0xb8] sm:$0xff]  ;;  %v246_v31 = vpop.permute.xlu0 %245 }
  0xe9   :  { %v344_v29 = vsub.f32 %v121_v34, %v2391_v25  ;;  %v1183_v13 = vsub.f32 1.0, %v1085_v30  ;;  %v1184_v57 = vsub.f32 1.0, %v1086_v47  ;;  %1656 = vmatmul.mubr.bf16.gmra.mrb[16].mxu0 %v1421_v14  ;;  %v684_v27 = vmax.f32 %v586_v44, 0.0 }
  0xea   :  { %v126_v11 = vpop.permute.xlu1 %125  ;;  %v1087_v8 = vand.u32 2147483647, %v989_v60  ;;  %v1088_v61 = vand.u32 2147483647, %v990_v4  ;;  %v685_v23 = vmax.f32 %v587_v62, 0.0  ;;  %v584_v19 = vsub.f32 1.0, %v486_v6 }
  0xeb   :  { %v443_v3 = vand.u32 2147483647, %v345_v28  ;;  %v585_v48 = vsub.f32 1.0, %v487_v24  ;;  %v346_v12 = vsub.f32 %v126_v11, %v2391_v25  ;;  %v347_v49 = vsub.f32 %v126_v11, %v2393_v26 }
  0xec   :  { %1982 = vset.pattern.permute.xlu1 %v2864_v0  ;;  %v1185_v33 = vsub.f32 1.0, %v1087_v8  ;;  %v1186_v15 = vsub.f32 1.0, %v1088_v61  ;;  %v442_v18 = vand.u32 2147483647, %v344_v29  ;;  %v1281_v52 = vmax.f32 %v1183_v13, 0.0  ;;  %v131_v61 = vpop.permute.xlu0 %130 }
  0xed   :  { %290 = vperm.xlu1 %1982, %v60_v54   ;;  %v1282_v56 = vmax.f32 %v1184_v57, 0.0  ;;  %v1139_v35 = vsub.f32 1.0, %v1041_v63  ;;  %v1140_v20 = vsub.f32 1.0, %v1042_v51  ;;  %v541_v5 = vsub.f32 1.0, %v443_v3 }
  0xee   :  { %v1283_v39 = vmax.f32 %v1185_v33, 0.0  ;;  %v1284_v41 = vmax.f32 %v1186_v15, 0.0  ;;  %v682_v58 = vmax.f32 %v584_v19, 0.0  ;;  %v683_v37 = vmax.f32 %v585_v48, 0.0 }
  0xef   :  { %v762_v59 = vpop.permute.xlu1 %761  ;;  %v444_v36 = vand.u32 2147483647, %v346_v12  ;;  %v445_v21 = vand.u32 2147483647, %v347_v49  ;;  %v947_v1 = vsub.f32 %v2367_v9, %v2363_v7  ;;  %v540_v22 = vsub.f32 1.0, %v442_v18 }
  0xf0   :  { %v1381_v43 = vmul.f32 %v1283_v39, %v684_v27  ;;  %v1382_v45 = vmul.f32 %v1284_v41, %v685_v23  ;;  %v1379_v55 = vmul.f32 %v1281_v52, %v682_v58  ;;  %v1380_v16 = vmul.f32 %v1282_v56, %v683_v37  ;;  %v62_v39 = vld [vmem:[%s2848_s0 + $0x170] sm:$0xff] }
  0xf1   :  { %1983 = vset.pattern.permute.xlu1 %v2865_v40  ;;  %v948_v32 = vsub.f32 %v2367_v9, %v2369_v10  ;;  %v945_v53 = vsub.f32 %v762_v59, %v2363_v7  ;;  %v946_v42 = vsub.f32 %v762_v59, %v2369_v10  ;;  %v542_v44 = vsub.f32 1.0, %v444_v36 }
  0xf2   :  { %893 = vperm.xlu1 %1983, %v60_v54   ;;  %v639_v54 = vmax.f32 %v541_v5, 0.0  ;;  %v1446_v30 = vpack.c.bf16 %v1382_v45, %v1380_v16  ;;  %v1445_v47 = vpack.c.bf16 %v1381_v43, %v1379_v55  ;;  %v543_v34 = vsub.f32 1.0, %v445_v21 }
  0xf3   :  { %v1043_v2 = vand.u32 2147483647, %v945_v53  ;;  %v1044_v14 = vand.u32 2147483647, %v946_v42  ;;  %v1237_v9 = vmax.f32 %v1139_v35, 0.0  ;;  %v638_v28 = vmax.f32 %v540_v22, 0.0 }
  0xf4   :  { %v2643_v46 = vpop.permute.xlu1 %240  ;;  %v1045_v62 = vand.u32 2147483647, %v947_v1  ;;  %1751 = vmatprep.mubr.bf16.mxu1 %v1446_v30  ;;  %v1046_v63 = vand.u32 2147483647, %v948_v32  ;;  %v640_v4 = vmax.f32 %v542_v44, 0.0  ;;  %v641_v51 = vmax.f32 %v543_v34, 0.0  ;;  %v256_v1 = vpop.permute.xlu0 %255 }
  0xf5   :  { %v1141_v24 = vsub.f32 1.0, %v1043_v2  ;;  %v1142_v59 = vsub.f32 1.0, %v1044_v14  ;;  %1752 = vmatmul.mubr.bf16.gmra.mrb[12].mxu1 %v1445_v47  ;;  %v1335_v27 = vmul.f32 %v1237_v9, %v638_v28  ;;  %v395_v8 = vsub.f32 %v246_v31, %v2393_v26 }
  0xf6   :  { %897 = vperm.xlu1 %1983, %v2329_v50   ;;  %v1238_v50 = vmax.f32 %v1140_v20, 0.0  ;;  %v1143_v57 = vsub.f32 1.0, %v1045_v62  ;;  %v951_v23 = vsub.f32 %v2383_v17, %v2363_v7  ;;  %v394_v3 = vsub.f32 %v246_v31, %v2391_v25 }
  0xf7   :  { %v1239_v29 = vmax.f32 %v1141_v24, 0.0  ;;  %v1240_v13 = vmax.f32 %v1142_v59, 0.0  ;;  %v1144_v15 = vsub.f32 1.0, %v1046_v63  ;;  %v348_v12 = vsub.f32 %v131_v61, %v2391_v25 }
  0xf8   :  { %v1336_v60 = vmul.f32 %v1238_v50, %v639_v54  ;;  %v349_v49 = vsub.f32 %v131_v61, %v2393_v26  ;;  %v952_v18 = vsub.f32 %v2383_v17, %v2369_v10  ;;  %v2676_v41 = vmax.f32 %v1143_v57, 0.0 }
  0xf9   :  { %v2648_v11 = vpop.permute.xlu1 %853  ;;  %v1337_v19 = vmul.f32 %v1239_v29, %v640_v4  ;;  %v1338_v48 = vmul.f32 %v1240_v13, %v641_v51  ;;  %v493_v20 = vand.u32 2147483647, %v395_v8  ;;  %v393_v5 = vsub.f32 %v2643_v46, %v2393_v26 }
  0xfa   :  { %1984 = vset.pattern.permute.xlu1 %v2864_v0  ;;  %v991_v52 = vsub.f32 %v2648_v11, %v2363_v7  ;;  %v992_v56 = vsub.f32 %v2648_v11, %v2369_v10  ;;  %v1049_v37 = vand.u32 2147483647, %v951_v23  ;;  %v492_v17 = vand.u32 2147483647, %v394_v3  ;;  %v141_v3 = vpop.permute.xlu0 %140 }
  0xfb   :  { %185 = vperm.xlu1 %1984, %v39_v38   ;;  %v1424_v35 = vpack.c.bf16 %v1338_v48, %v1336_v60  ;;  %v1423_v58 = vpack.c.bf16 %v1337_v19, %v1335_v27  ;;  %v392_v43 = vsub.f32 %v2643_v46, %v2391_v25  ;;  %v446_v36 = vand.u32 2147483647, %v348_v12 }
  0xfc   :  { %v447_v21 = vand.u32 2147483647, %v349_v49  ;;  %v1090_v22 = vand.u32 2147483647, %v992_v56  ;;  %v1050_v11 = vand.u32 2147483647, %v952_v18  ;;  %v398_v32 = vsub.f32 %v256_v1, %v2391_v25 }
  0xfd   :  { %v858_v6 = vpop.permute.xlu1 %857  ;;  %1663 = vmatprep.mubr.bf16.mxu0 %v1424_v35  ;;  %v1089_v53 = vand.u32 2147483647, %v991_v52  ;;  %v1242_v42 = vmax.f32 %v1144_v15, 0.0  ;;  %v491_v50 = vand.u32 2147483647, %v393_v5  ;;  %v590_v31 = vsub.f32 1.0, %v492_v17 }
  0xfe   :  { %v993_v45 = vsub.f32 %v858_v6, %v2363_v7  ;;  %1664 = vmatmul.mubr.bf16.gmra.mrb[20].mxu0 %v1423_v58  ;;  %v994_v55 = vsub.f32 %v858_v6, %v2369_v10  ;;  %v399_v30 = vsub.f32 %v256_v1, %v2393_v26  ;;  %v490_v47 = vand.u32 2147483647, %v392_v43  ;;  %v2009_v49 = vld [vmem:[%s2848_s0 + $0x178] sm:$0xff] }
  0xff   :  { %1986 = vset.pattern.permute.xlu1 %v2865_v40  ;;  %v544_v34 = vsub.f32 1.0, %v446_v36  ;;  %v545_v2 = vsub.f32 1.0, %v447_v21  ;;  %v1188_v14 = vsub.f32 1.0, %v1090_v22  ;;  %v1147_v62 = vsub.f32 1.0, %v1049_v37  ;;  %v41_v37 = vld [vmem:[%s2848_s0 + $0xc8] sm:$0xff] }
 0x100   :  { %809 = vperm.xlu1 %1986, %v39_v38   ;;  %v1091_v46 = vand.u32 2147483647, %v993_v45  ;;  %v591_v38 = vsub.f32 1.0, %v493_v20  ;;  %v1092_v54 = vand.u32 2147483647, %v994_v55  ;;  %v1148_v28 = vsub.f32 1.0, %v1050_v11 }
 0x101   :  { %v496_v6 = vand.u32 2147483647, %v398_v32  ;;  %v1187_v24 = vsub.f32 1.0, %v1089_v53  ;;  %v589_v60 = vsub.f32 1.0, %v491_v50  ;;  %v688_v29 = vmax.f32 %v590_v31, 0.0 }
 0x102   :  { %v2663_v33 = vpop.permute.xlu1 %135  ;;  %v1189_v44 = vsub.f32 1.0, %v1091_v46  ;;  %v1190_v9 = vsub.f32 1.0, %v1092_v54  ;;  %v689_v63 = vmax.f32 %v591_v38, 0.0  ;;  %v588_v13 = vsub.f32 1.0, %v490_v47 }
 0x103   :  { %v350_v51 = vsub.f32 %v2663_v33, %v2391_v25  ;;  %v351_v27 = vsub.f32 %v2663_v33, %v2393_v26  ;;  %v642_v8 = vmax.f32 %v544_v34, 0.0  ;;  %v643_v61 = vmax.f32 %v545_v2, 0.0 }
 0x104   :  { %1987 = vset.pattern.permute.xlu1 %v2864_v0  ;;  %v1288_v4 = vmax.f32 %v1190_v9, 0.0  ;;  %v1287_v57 = vmax.f32 %v1189_v44, 0.0  ;;  %v497_v23 = vand.u32 2147483647, %v399_v30  ;;  %v1286_v19 = vmax.f32 %v1188_v14, 0.0 }
 0x105   :  { %300 = vperm.xlu1 %1987, %v62_v39   ;;  %v594_v48 = vsub.f32 1.0, %v496_v6  ;;  %v352_v15 = vsub.f32 %v141_v3, %v2391_v25  ;;  %v1285_v12 = vmax.f32 %v1187_v24, 0.0  ;;  %v2698_v18 = vmax.f32 %v1147_v62, 0.0 }
 0x106   :  { %v687_v52 = vmax.f32 %v589_v60, 0.0  ;;  %v1386_v56 = vmul.f32 %v1288_v4, %v689_v63  ;;  %v448_v35 = vand.u32 2147483647, %v350_v51  ;;  %v686_v20 = vmax.f32 %v588_v13, 0.0 }
 0x107   :  { %v2685_v16 = vpop.permute.xlu1 %769  ;;  %v1385_v5 = vmul.f32 %v1287_v57, %v688_v29  ;;  %v449_v58 = vand.u32 2147483647, %v351_v27  ;;  %v2706_v17 = vmul.f32 %v2676_v41, %v642_v8  ;;  %v2708_v43 = vmul.f32 %v1242_v42, %v643_v61 }
 0x108   :  { %v595_v45 = vsub.f32 1.0, %v497_v23  ;;  %v1384_v36 = vmul.f32 %v1286_v19, %v687_v52  ;;  %v2710_v21 = vmax.f32 %v594_v48, 0.0  ;;  %v353_v1 = vsub.f32 %v141_v3, %v2393_v26 }
 0x109   :  { %1988 = vset.pattern.permute.xlu1 %v2865_v40  ;;  %v2713_v22 = vand.u32 2147483647, %v352_v15  ;;  %v1383_v55 = vmul.f32 %v1285_v12, %v686_v20  ;;  %v546_v11 = vsub.f32 1.0, %v448_v35  ;;  %v949_v32 = vsub.f32 %v2685_v16, %v2363_v7 }
 0x10a   :  { %901 = vperm.xlu1 %1988, %v62_v39   ;;  %v2700_v39 = vmax.f32 %v1148_v28, 0.0  ;;  %v950_v41 = vsub.f32 %v2685_v16, %v2369_v10  ;;  %v1448_v53 = vpack.c.bf16 %v1386_v56, %v1384_v36  ;;  %v547_v42 = vsub.f32 1.0, %v449_v58 }
 0x10b   :  { %v1447_v38 = vpack.c.bf16 %v1385_v5, %v1383_v55  ;;  %v693_v31 = vmax.f32 %v595_v45, 0.0  ;;  %v1047_v30 = vand.u32 2147483647, %v949_v32  ;;  %v2723_v34 = vand.u32 2147483647, %v353_v1  ;;  %v2010_v5 = vld [vmem:[%s2848_s0 + $0x180] sm:$0xff] }
 0x10c   :  { %v251_v59 = vpop.permute.xlu1 %250  ;;  %v1048_v47 = vand.u32 2147483647, %v950_v41  ;;  %1759 = vmatprep.mubr.bf16.mxu1 %v1448_v53  ;;  %v548_v2 = vsub.f32 1.0, %v2713_v22  ;;  %v644_v24 = vmax.f32 %v546_v11, 0.0  ;;  %v266_v53 = vpop.permute.xlu0 %265  ;;  %s2037_s0 = smov [#allocation2]  }
 0x10d   :  { %v396_v50 = vsub.f32 %v251_v59, %v2391_v25  ;;  %v397_v54 = vsub.f32 %v251_v59, %v2393_v26  ;;  %1760 = vmatmul.mubr.bf16.gmra.mrb[16].mxu1 %v1447_v38  ;;  %v1145_v9 = vsub.f32 1.0, %v1047_v30  ;;  %v645_v59 = vmax.f32 %v547_v42, 0.0  ;;  %s1877_s11 = sshll.u32 %s2037_s0, 4  ;;  %s1878_s11 = int_to_ptr.vmem [resolvable:$true] %s1877_s11 }
 0x10e   :  { %905 = vperm.xlu1 %1988, %v2009_v49   ;;  %v1146_v62 = vsub.f32 1.0, %v1048_v47  ;;  %v549_v27 = vsub.f32 1.0, %v2723_v34  ;;  %v402_v30 = vsub.f32 %v266_v53, %v2391_v25  ;;  %v403_v47 = vsub.f32 %v266_v53, %v2393_v26  ;;  %s2011_s12 = scalar_lea.vmem %s1878_s11, 6272  ;;  %p2016_p1 = scmp.lt.s32.totalorder %s1878_s11, %s1878_s11 }
 0x10f   :  { %v494_v16 = vand.u32 2147483647, %v396_v50  ;;  %v495_v28 = vand.u32 2147483647, %v397_v54  ;;  %v1243_v51 = vmax.f32 %v1145_v9, 0.0  ;;  %v646_v54 = vmax.f32 %v548_v2, 0.0  ;;  %p2012_p0 = scmp.ne.s32.totalorder %s1878_s11, %s2011_s12  ;;  %p2017_p2 = scmp.lt.s32.totalorder %s2011_s12, %s2011_s12 }
 0x110   :  { %v1244_v29 = vmax.f32 %v1146_v62, 0.0  ;;  %v500_v2 = vand.u32 2147483647, %v402_v30 }
 0x111   :  { %v862_v33 = vpop.permute.xlu1 %861  ;;  %v592_v8 = vsub.f32 1.0, %v494_v16  ;;  %v1341_v3 = vmul.f32 %v1243_v51, %v644_v24  ;;  %v647_v16 = vmax.f32 %v549_v27, 0.0  ;;  %p2018_p3 = por %p2017_p2, %p2016_p1 }
 0x112   :  { %1989 = vset.pattern.permute.xlu1 %v2864_v0  ;;  %v995_v44 = vsub.f32 %v862_v33, %v2363_v7  ;;  %v996_v14 = vsub.f32 %v862_v33, %v2369_v10  ;;  %v1342_v19 = vmul.f32 %v1244_v29, %v645_v59 }
 0x113   :  { %195 = vperm.xlu1 %1989, %v41_v37   ;;  %v1425_v33 = vpack.c.bf16 %v1341_v3, %v2706_v17  ;;  %p2019_p4 = pnand %p2018_p3, %p2012_p0 }
 0x114   :  { %v1093_v6 = vand.u32 2147483647, %v995_v44  ;;  %v1094_v63 = vand.u32 2147483647, %v996_v14  ;;  %v1426_v35 = vpack.c.bf16 %v1342_v19, %v2708_v43 }
 0x115   :  { %v866_v46 = vpop.permute.xlu1 %865 }
 0x116   :  { %v997_v60 = vsub.f32 %v866_v46, %v2363_v7  ;;  %v1191_v13 = vsub.f32 1.0, %v1093_v6  ;;  %v998_v57 = vsub.f32 %v866_v46, %v2369_v10  ;;  %v1192_v61 = vsub.f32 1.0, %v1094_v63  ;;  %1671 = vmatprep.mubr.bf16.mxu0 %v1426_v35 }
 0x117   :  { %1991 = vset.pattern.permute.xlu1 %v2865_v40  ;;  %v593_v40 = vsub.f32 1.0, %v495_v28  ;;  %1672 = vmatmul.mubr.bf16.gmra.mrb[24].mxu0 %v1425_v33  ;;  %v501_v63 = vand.u32 2147483647, %v403_v47 }
 0x118   :  { %817 = vperm.xlu1 %1991, %v41_v37   ;;  %v1095_v23 = vand.u32 2147483647, %v997_v60  ;;  %v1096_v48 = vand.u32 2147483647, %v998_v57  ;;  %v1289_v15 = vmax.f32 %v1191_v13, 0.0  ;;  %v1290_v56 = vmax.f32 %v1192_v61, 0.0 }
 0x119   :  { %v690_v37 = vmax.f32 %v592_v8, 0.0  ;;  %v691_v22 = vmax.f32 %v593_v40, 0.0  ;;  %v1343_v60 = vmul.f32 %v2698_v18, %v646_v54  ;;  %v2867_v57 = vld [vmem:[#allocation5_spill] sm:$0xff]  ;;  %v151_v18 = vpop.permute.xlu0 %150 }
 0x11a   :  { %v146_v4 = vpop.permute.xlu1 %145  ;;  %v1193_v12 = vsub.f32 1.0, %v1095_v23  ;;  %v1194_v20 = vsub.f32 1.0, %v1096_v48  ;;  %v955_v27 = vsub.f32 %v2867_v57, %v2363_v7  ;;  %v956_v48 = vsub.f32 %v2867_v57, %v2369_v10 }
 0x11b   :  { %v354_v49 = vsub.f32 %v146_v4, %v2391_v25  ;;  %v355_v52 = vsub.f32 %v146_v4, %v2393_v26  ;;  %v1387_v11 = vmul.f32 %v1289_v15, %v690_v37  ;;  %v1388_v46 = vmul.f32 %v1290_v56, %v691_v22 }
 0x11c   :  { %1992 = vset.pattern.permute.xlu1 %v2864_v0  ;;  %v1291_v45 = vmax.f32 %v1193_v12, 0.0  ;;  %v1292_v55 = vmax.f32 %v1194_v20, 0.0  ;;  %v1344_v4 = vmul.f32 %v2700_v39, %v647_v16  ;;  %v598_v12 = vsub.f32 1.0, %v500_v2 }
 0x11d   :  { %310 = vperm.xlu1 %1992, %v2010_v5   ;;  %v452_v36 = vand.u32 2147483647, %v354_v49  ;;  %v453_v1 = vand.u32 2147483647, %v355_v52  ;;  %v599_v49 = vsub.f32 1.0, %v501_v63  ;;  %v356_v52 = vsub.f32 %v151_v18, %v2391_v25 }
 0x11e   :  { %v1389_v17 = vmul.f32 %v1291_v45, %v2710_v21  ;;  %v1390_v42 = vmul.f32 %v1292_v55, %v693_v31  ;;  %v357_v56 = vsub.f32 %v151_v18, %v2393_v26  ;;  %v1053_v37 = vand.u32 2147483647, %v955_v27 }
 0x11f   :  { %v778_v58 = vpop.permute.xlu1 %777  ;;  %v550_v32 = vsub.f32 1.0, %v452_v36  ;;  %v551_v41 = vsub.f32 1.0, %v453_v1  ;;  %v1054_v1 = vand.u32 2147483647, %v956_v48 }
 0x120   :  { %v953_v0 = vsub.f32 %v778_v58, %v2363_v7  ;;  %v954_v43 = vsub.f32 %v778_v58, %v2369_v10  ;;  %v1449_v44 = vpack.c.bf16 %v1389_v17, %v1387_v11  ;;  %v1450_v62 = vpack.c.bf16 %v1390_v42, %v1388_v46 }
 0x121   :  { %v648_v28 = vmax.f32 %v550_v32, 0.0  ;;  %v649_v21 = vmax.f32 %v551_v41, 0.0  ;;  %v454_v32 = vand.u32 2147483647, %v356_v52  ;;  %v455_v41 = vand.u32 2147483647, %v357_v56 }
 0x122   :  { %v1051_v38 = vand.u32 2147483647, %v953_v0  ;;  %v1052_v50 = vand.u32 2147483647, %v954_v43  ;;  %1767 = vmatprep.mubr.bf16.mxu1 %v1450_v62  ;;  %v696_v0 = vmax.f32 %v598_v12, 0.0  ;;  %v697_v43 = vmax.f32 %v599_v49, 0.0 }
 0x123   :  { %1768 = vmatmul.mubr.bf16.gmra.mrb[20].mxu1 %v1449_v44 }
 0x124   :  { %v261_v34 = vpop.permute.xlu1 %260  ;;  %v1149_v14 = vsub.f32 1.0, %v1051_v38  ;;  %v1150_v9 = vsub.f32 1.0, %v1052_v50 }
 0x125   :  { %v400_v31 = vsub.f32 %v261_v34, %v2391_v25  ;;  %v401_v59 = vsub.f32 %v261_v34, %v2393_v26 }
 0x126   :  { %v1247_v6 = vmax.f32 %v1149_v14, 0.0  ;;  %v1248_v24 = vmax.f32 %v1150_v9, 0.0 }
 0x127   :  { %v498_v23 = vand.u32 2147483647, %v400_v31  ;;  %v499_v3 = vand.u32 2147483647, %v401_v59  ;;  %v553_v31 = vsub.f32 1.0, %v455_v41  ;;  %v2868_v41 = vld [vmem:[#allocation6_spill] sm:$0xff] }
 0x128   :  { %v1345_v51 = vmul.f32 %v1247_v6, %v648_v28  ;;  %v1346_v29 = vmul.f32 %v1248_v24, %v649_v21  ;;  %v1151_v21 = vsub.f32 1.0, %v1053_v37  ;;  %v1152_v6 = vsub.f32 1.0, %v1054_v1 }
 0x129   :  { %v870_v13 = vpop.permute.xlu1 %869  ;;  %v596_v45 = vsub.f32 1.0, %v498_v23  ;;  %v597_v36 = vsub.f32 1.0, %v499_v3  ;;  %v552_v24 = vsub.f32 1.0, %v454_v32  ;;  %v651_v23 = vmax.f32 %v553_v31, 0.0  ;;  %v276_v3 = vpop.permute.xlu0 %275 }
 0x12a   :  { %v999_v8 = vsub.f32 %v870_v13, %v2363_v7  ;;  %v1000_v61 = vsub.f32 %v870_v13, %v2369_v10  ;;  %v1428_v19 = vpack.c.bf16 %v1346_v29, %v1344_v4  ;;  %v1427_v40 = vpack.c.bf16 %v1345_v51, %v1343_v60 }
 0x12b   :  { %v694_v38 = vmax.f32 %v596_v45, 0.0  ;;  %v695_v50 = vmax.f32 %v597_v36, 0.0  ;;  %v1249_v27 = vmax.f32 %v1151_v21, 0.0  ;;  %v406_v18 = vsub.f32 %v276_v3, %v2391_v25 }
 0x12c   :  { %v1097_v15 = vand.u32 2147483647, %v999_v8  ;;  %v1098_v39 = vand.u32 2147483647, %v1000_v61  ;;  %1679 = vmatprep.mubr.bf16.mxu0 %v1428_v19  ;;  %v650_v8 = vmax.f32 %v552_v24, 0.0  ;;  %v1250_v61 = vmax.f32 %v1152_v6, 0.0 }
 0x12d   :  { %v874_v35 = vpop.permute.xlu1 %873  ;;  %1680 = vmatmul.mubr.bf16.gmra.mrb[28].mxu0 %v1427_v40  ;;  %v504_v37 = vand.u32 2147483647, %v406_v18 }
 0x12e   :  { %v1195_v33 = vsub.f32 1.0, %v1097_v15  ;;  %v1196_v20 = vsub.f32 1.0, %v1098_v39  ;;  %v1001_v5 = vsub.f32 %v874_v35, %v2363_v7  ;;  %v1002_v58 = vsub.f32 %v874_v35, %v2369_v10 }
 0x12f   :  { %v407_v15 = vsub.f32 %v276_v3, %v2393_v26  ;;  %v1347_v56 = vmul.f32 %v1249_v27, %v650_v8 }
 0x130   :  { %v1099_v22 = vand.u32 2147483647, %v1001_v5  ;;  %v1100_v55 = vand.u32 2147483647, %v1002_v58  ;;  %v1293_v11 = vmax.f32 %v1195_v33, 0.0  ;;  %v1294_v17 = vmax.f32 %v1196_v20, 0.0 }
 0x131   :  { %v1348_v33 = vmul.f32 %v1250_v61, %v651_v23  ;;  %v505_v45 = vand.u32 2147483647, %v407_v15 }
 0x132   :  { %v1197_v53 = vsub.f32 1.0, %v1099_v22  ;;  %v1198_v46 = vsub.f32 1.0, %v1100_v55  ;;  %v156_v42 = vpop.permute.xlu1 %155  ;;  %v1391_v34 = vmul.f32 %v1293_v11, %v694_v38  ;;  %v1392_v16 = vmul.f32 %v1294_v17, %v695_v50 }
 0x133   :  { %v358_v54 = vsub.f32 %v156_v42, %v2391_v25  ;;  %v359_v30 = vsub.f32 %v156_v42, %v2393_v26  ;;  %v602_v42 = vsub.f32 1.0, %v504_v37  ;;  %v603_v38 = vsub.f32 1.0, %v505_v45 }
 0x134   :  { %v1295_v47 = vmax.f32 %v1197_v53, 0.0  ;;  %v1296_v44 = vmax.f32 %v1198_v46, 0.0  ;;  %v959_v53 = vsub.f32 %v2868_v41, %v2363_v7  ;;  %v960_v46 = vsub.f32 %v2868_v41, %v2369_v10 }
 0x135   :  { %v456_v62 = vand.u32 2147483647, %v358_v54  ;;  %v457_v28 = vand.u32 2147483647, %v359_v30  ;;  %v161_v54 = vpop.permute.xlu0 %160  ;;  %v700_v31 = vmax.f32 %v602_v42, 0.0 }
 0x136   :  { %v1393_v14 = vmul.f32 %v1295_v47, %v696_v0  ;;  %v1394_v9 = vmul.f32 %v1296_v44, %v697_v43  ;;  %v1057_v6 = vand.u32 2147483647, %v959_v53  ;;  %v1058_v24 = vand.u32 2147483647, %v960_v46 }
 0x137   :  { %v786_v59 = vpop.permute.xlu1 %785  ;;  %v554_v51 = vsub.f32 1.0, %v456_v62  ;;  %v555_v29 = vsub.f32 1.0, %v457_v28 }
 0x138   :  { %v957_v2 = vsub.f32 %v786_v59, %v2363_v7  ;;  %v958_v63 = vsub.f32 %v786_v59, %v2369_v10  ;;  %v1452_v60 = vpack.c.bf16 %v1394_v9, %v1392_v16  ;;  %v1451_v4 = vpack.c.bf16 %v1393_v14, %v1391_v34 }
 0x139   :  { %v652_v39 = vmax.f32 %v554_v51, 0.0  ;;  %v653_v12 = vmax.f32 %v555_v29, 0.0  ;;  %v360_v16 = vsub.f32 %v161_v54, %v2391_v25  ;;  %v361_v14 = vsub.f32 %v161_v54, %v2393_v26  ;;  %v286_v41 = vpop.permute.xlu0 %285 }
 0x13a   :  { %v1055_v13 = vand.u32 2147483647, %v957_v2  ;;  %v1056_v57 = vand.u32 2147483647, %v958_v63  ;;  %1775 = vmatprep.mubr.bf16.mxu1 %v1452_v60  ;;  %v701_v59 = vmax.f32 %v603_v38, 0.0  ;;  %v1155_v15 = vsub.f32 1.0, %v1057_v6 }
 0x13b   :  { %1776 = vmatmul.mubr.bf16.gmra.mrb[24].mxu1 %v1451_v4  ;;  %v458_v29 = vand.u32 2147483647, %v360_v16 }
 0x13c   :  { %v1153_v19 = vsub.f32 1.0, %v1055_v13  ;;  %v1154_v40 = vsub.f32 1.0, %v1056_v57  ;;  %v271_v48 = vpop.permute.xlu1 %270  ;;  %v459_v13 = vand.u32 2147483647, %v361_v14  ;;  %v411_v14 = vsub.f32 %v286_v41, %v2393_v26 }
 0x13d   :  { %v404_v35 = vsub.f32 %v271_v48, %v2391_v25  ;;  %v405_v58 = vsub.f32 %v271_v48, %v2393_v26 }
 0x13e   :  { %v1251_v49 = vmax.f32 %v1153_v19, 0.0  ;;  %v1252_v52 = vmax.f32 %v1154_v40, 0.0 }
 0x13f   :  { %v502_v43 = vand.u32 2147483647, %v404_v35  ;;  %v503_v11 = vand.u32 2147483647, %v405_v58 }
 0x140   :  { %v1349_v20 = vmul.f32 %v1251_v49, %v652_v39  ;;  %v1350_v5 = vmul.f32 %v1252_v52, %v653_v12  ;;  %v1156_v39 = vsub.f32 1.0, %v1058_v24  ;;  %v556_v52 = vsub.f32 1.0, %v458_v29 }
 0x141   :  { %v878_v36 = vpop.permute.xlu1 %877  ;;  %v600_v9 = vsub.f32 1.0, %v502_v43  ;;  %v601_v62 = vsub.f32 1.0, %v503_v11 }
 0x142   :  { %v1003_v1 = vsub.f32 %v878_v36, %v2363_v7  ;;  %v1004_v22 = vsub.f32 %v878_v36, %v2369_v10  ;;  %v1430_v55 = vpack.c.bf16 %v1350_v5, %v1348_v33  ;;  %v1429_v0 = vpack.c.bf16 %v1349_v20, %v1347_v56 }
 0x143   :  { %v698_v8 = vmax.f32 %v600_v9, 0.0  ;;  %v699_v61 = vmax.f32 %v601_v62, 0.0  ;;  %v557_v56 = vsub.f32 1.0, %v459_v13 }
 0x144   :  { %v1101_v17 = vand.u32 2147483647, %v1003_v1  ;;  %v1102_v32 = vand.u32 2147483647, %v1004_v22  ;;  %1687 = vmatprep.mubr.bf16.mxu0 %v1430_v55  ;;  %v1253_v22 = vmax.f32 %v1155_v15, 0.0  ;;  %v1254_v55 = vmax.f32 %v1156_v39, 0.0 }
 0x145   :  { %1688 = vmatmul.mubr.bf16.gmra.mrb[32].mxu0 %v1429_v0  ;;  %v882_v50 = vpop.permute.xlu1 %881  ;;  %v654_v0 = vmax.f32 %v556_v52, 0.0  ;;  %v655_v43 = vmax.f32 %v557_v56, 0.0 }
 0x146   :  { %v1199_v30 = vsub.f32 1.0, %v1101_v17  ;;  %v1200_v47 = vsub.f32 1.0, %v1102_v32  ;;  %v1005_v44 = vsub.f32 %v882_v50, %v2363_v7  ;;  %v1006_v34 = vsub.f32 %v882_v50, %v2369_v10 }
 0x147   :  { %v1351_v50 = vmul.f32 %v1253_v22, %v654_v0  ;;  %v1352_v54 = vmul.f32 %v1254_v55, %v655_v43 }
 0x148   :  { %v1103_v28 = vand.u32 2147483647, %v1005_v44  ;;  %v1104_v21 = vand.u32 2147483647, %v1006_v34  ;;  %v1297_v2 = vmax.f32 %v1199_v30, 0.0  ;;  %v1298_v63 = vmax.f32 %v1200_v47, 0.0 }
 0x149   :  { %v410_v30 = vsub.f32 %v286_v41, %v2391_v25 }
 0x14a   :  { %v1201_v60 = vsub.f32 1.0, %v1103_v28  ;;  %v1202_v4 = vsub.f32 1.0, %v1104_v21  ;;  %v166_v51 = vpop.permute.xlu1 %165  ;;  %v1395_v19 = vmul.f32 %v1297_v2, %v698_v8  ;;  %v1396_v40 = vmul.f32 %v1298_v63, %v699_v61  ;;  %v171_v63 = vpop.permute.xlu0 %170 }
 0x14b   :  { %v362_v57 = vsub.f32 %v166_v51, %v2391_v25  ;;  %v363_v27 = vsub.f32 %v166_v51, %v2393_v26  ;;  %v508_v24 = vand.u32 2147483647, %v410_v30  ;;  %v509_v2 = vand.u32 2147483647, %v411_v14  ;;  %v2869_v51 = vld [vmem:[#allocation7_spill] sm:$0xff] }
 0x14c   :  { %v1299_v23 = vmax.f32 %v1201_v60, 0.0  ;;  %v1300_v3 = vmax.f32 %v1202_v4, 0.0  ;;  %v963_v29 = vsub.f32 %v2869_v51, %v2363_v7  ;;  %v964_v13 = vsub.f32 %v2869_v51, %v2369_v10 }
 0x14d   :  { %v460_v12 = vand.u32 2147483647, %v362_v57  ;;  %v461_v49 = vand.u32 2147483647, %v363_v27  ;;  %v364_v57 = vsub.f32 %v171_v63, %v2391_v25  ;;  %v365_v27 = vsub.f32 %v171_v63, %v2393_v26 }
 0x14e   :  { %v1397_v48 = vmul.f32 %v1299_v23, %v700_v31  ;;  %v1398_v18 = vmul.f32 %v1300_v3, %v701_v59  ;;  %v607_v15 = vsub.f32 1.0, %v509_v2  ;;  %v1062_v52 = vand.u32 2147483647, %v964_v13  ;;  %v296_v2 = vpop.permute.xlu0 %295 }
 0x14f   :  { %v794_v35 = vpop.permute.xlu1 %793  ;;  %v558_v37 = vsub.f32 1.0, %v460_v12  ;;  %v559_v45 = vsub.f32 1.0, %v461_v49  ;;  %v1061_v49 = vand.u32 2147483647, %v963_v29 }
 0x150   :  { %v1454_v33 = vpack.c.bf16 %v1398_v18, %v1396_v40  ;;  %v1453_v20 = vpack.c.bf16 %v1397_v48, %v1395_v19  ;;  %v961_v5 = vsub.f32 %v794_v35, %v2363_v7  ;;  %v962_v58 = vsub.f32 %v794_v35, %v2369_v10 }
 0x151   :  { %v656_v53 = vmax.f32 %v558_v37, 0.0  ;;  %v657_v46 = vmax.f32 %v559_v45, 0.0  ;;  %v606_v18 = vsub.f32 1.0, %v508_v24  ;;  %v705_v0 = vmax.f32 %v607_v15, 0.0 }
 0x152   :  { %1783 = vmatprep.mubr.bf16.mxu1 %v1454_v33  ;;  %v1059_v36 = vand.u32 2147483647, %v961_v5  ;;  %v1060_v1 = vand.u32 2147483647, %v962_v58  ;;  %v462_v33 = vand.u32 2147483647, %v364_v57  ;;  %v181_v15 = vpop.permute.xlu0 %180 }
 0x153   :  { %1784 = vmatmul.mubr.bf16.gmra.mrb[28].mxu1 %v1453_v20  ;;  %v463_v20 = vand.u32 2147483647, %v365_v27  ;;  %v704_v55 = vmax.f32 %v606_v18, 0.0  ;;  %v414_v27 = vsub.f32 %v296_v2, %v2391_v25 }
 0x154   :  { %v1157_v11 = vsub.f32 1.0, %v1059_v36  ;;  %v1158_v17 = vsub.f32 1.0, %v1060_v1  ;;  %v281_v32 = vpop.permute.xlu1 %280 }
 0x155   :  { %v408_v34 = vsub.f32 %v281_v32, %v2391_v25  ;;  %v409_v16 = vsub.f32 %v281_v32, %v2393_v26  ;;  %v561_v30 = vsub.f32 1.0, %v463_v20 }
 0x156   :  { %v1255_v42 = vmax.f32 %v1157_v11, 0.0  ;;  %v1256_v38 = vmax.f32 %v1158_v17, 0.0 }
 0x157   :  { %v506_v31 = vand.u32 2147483647, %v408_v34  ;;  %v507_v59 = vand.u32 2147483647, %v409_v16 }
 0x158   :  { %v1353_v47 = vmul.f32 %v1255_v42, %v656_v53  ;;  %v1354_v44 = vmul.f32 %v1256_v38, %v657_v46  ;;  %v1159_v38 = vsub.f32 1.0, %v1061_v49 }
 0x159   :  { %v886_v9 = vpop.permute.xlu1 %885  ;;  %v604_v40 = vsub.f32 1.0, %v506_v31  ;;  %v605_v48 = vsub.f32 1.0, %v507_v59  ;;  %v659_v59 = vmax.f32 %v561_v30, 0.0 }
 0x15a   :  { %v1432_v62 = vpack.c.bf16 %v1354_v44, %v1352_v54  ;;  %v1431_v28 = vpack.c.bf16 %v1353_v47, %v1351_v50  ;;  %v1007_v21 = vsub.f32 %v886_v9, %v2363_v7  ;;  %v1008_v6 = vsub.f32 %v886_v9, %v2369_v10 }
 0x15b   :  { %v702_v45 = vmax.f32 %v604_v40, 0.0  ;;  %v703_v36 = vmax.f32 %v605_v48, 0.0  ;;  %v1160_v50 = vsub.f32 1.0, %v1062_v52  ;;  %v560_v54 = vsub.f32 1.0, %v462_v33 }
 0x15c   :  { %1695 = vmatprep.mubr.bf16.mxu0 %v1432_v62  ;;  %v1105_v60 = vand.u32 2147483647, %v1007_v21  ;;  %v1106_v4 = vand.u32 2147483647, %v1008_v6  ;;  %v1257_v6 = vmax.f32 %v1159_v38, 0.0 }
 0x15d   :  { %1696 = vmatmul.mubr.bf16.gmra.mrb[36].mxu0 %v1431_v28  ;;  %v890_v8 = vpop.permute.xlu1 %889  ;;  %v1258_v24 = vmax.f32 %v1160_v50, 0.0  ;;  %v658_v31 = vmax.f32 %v560_v54, 0.0 }
 0x15e   :  { %v1203_v61 = vsub.f32 1.0, %v1105_v60  ;;  %v1204_v23 = vsub.f32 1.0, %v1106_v4  ;;  %v1009_v3 = vsub.f32 %v890_v8, %v2363_v7  ;;  %v1010_v19 = vsub.f32 %v890_v8, %v2369_v10 }
 0x15f   :  { %v415_v8 = vsub.f32 %v296_v2, %v2393_v26 }
 0x160   :  { %v1107_v39 = vand.u32 2147483647, %v1009_v3  ;;  %v1108_v12 = vand.u32 2147483647, %v1010_v19  ;;  %v1301_v56 = vmax.f32 %v1203_v61, 0.0  ;;  %v1302_v35 = vmax.f32 %v1204_v23, 0.0 }
 0x161   :  { %v1355_v3 = vmul.f32 %v1257_v6, %v658_v31  ;;  %v1356_v19 = vmul.f32 %v1258_v24, %v659_v59  ;;  %v513_v20 = vand.u32 2147483647, %v415_v8 }
 0x162   :  { %v1205_v5 = vsub.f32 1.0, %v1107_v39  ;;  %v1206_v58 = vsub.f32 1.0, %v1108_v12  ;;  %v176_v37 = vpop.permute.xlu1 %175  ;;  %v1399_v17 = vmul.f32 %v1301_v56, %v702_v45  ;;  %v1400_v32 = vmul.f32 %v1302_v35, %v703_v36 }
 0x163   :  { %v366_v1 = vsub.f32 %v176_v37, %v2391_v25  ;;  %v367_v22 = vsub.f32 %v176_v37, %v2393_v26  ;;  %v512_v56 = vand.u32 2147483647, %v414_v27  ;;  %v2870_v37 = vld [vmem:[#allocation8_spill] sm:$0xff] }
 0x164   :  { %v1303_v43 = vmax.f32 %v1205_v5, 0.0  ;;  %v1304_v11 = vmax.f32 %v1206_v58, 0.0  ;;  %v967_v45 = vsub.f32 %v2870_v37, %v2363_v7  ;;  %v968_v36 = vsub.f32 %v2870_v37, %v2369_v10 }
 0x165   :  { %v464_v46 = vand.u32 2147483647, %v366_v1  ;;  %v465_v42 = vand.u32 2147483647, %v367_v22  ;;  %v368_v1 = vsub.f32 %v181_v15, %v2391_v25  ;;  %v369_v22 = vsub.f32 %v181_v15, %v2393_v26 }
 0x166   :  { %v1401_v41 = vmul.f32 %v1303_v43, %v704_v55  ;;  %v1402_v53 = vmul.f32 %v1304_v11, %v705_v0  ;;  %v1065_v50 = vand.u32 2147483647, %v967_v45  ;;  %v1066_v54 = vand.u32 2147483647, %v968_v36 }
 0x167   :  { %v802_v47 = vpop.permute.xlu1 %801  ;;  %v562_v9 = vsub.f32 1.0, %v464_v46  ;;  %v563_v62 = vsub.f32 1.0, %v465_v42  ;;  %v611_v46 = vsub.f32 1.0, %v513_v20 }
 0x168   :  { %v965_v44 = vsub.f32 %v802_v47, %v2363_v7  ;;  %v966_v34 = vsub.f32 %v802_v47, %v2369_v10  ;;  %v1456_v16 = vpack.c.bf16 %v1402_v53, %v1400_v32  ;;  %v1455_v14 = vpack.c.bf16 %v1401_v41, %v1399_v17 }
 0x169   :  { %v660_v51 = vmax.f32 %v562_v9, 0.0  ;;  %v661_v29 = vmax.f32 %v563_v62, 0.0  ;;  %v610_v53 = vsub.f32 1.0, %v512_v56  ;;  %v709_v31 = vmax.f32 %v611_v46, 0.0 }
 0x16a   :  { %v1063_v28 = vand.u32 2147483647, %v965_v44  ;;  %v1064_v21 = vand.u32 2147483647, %v966_v34  ;;  %1791 = vmatprep.mubr.bf16.mxu1 %v1456_v16  ;;  %v466_v44 = vand.u32 2147483647, %v368_v1 }
 0x16b   :  { %1792 = vmatmul.mubr.bf16.gmra.mrb[32].mxu1 %v1455_v14  ;;  %v467_v34 = vand.u32 2147483647, %v369_v22  ;;  %v708_v24 = vmax.f32 %v610_v53, 0.0  ;;  %v1163_v27 = vsub.f32 1.0, %v1065_v50  ;;  %v1164_v8 = vsub.f32 1.0, %v1066_v54 }
 0x16c   :  { %v1161_v63 = vsub.f32 1.0, %v1063_v28  ;;  %v1162_v60 = vsub.f32 1.0, %v1064_v21  ;;  %v291_v4 = vpop.permute.xlu1 %290 }
 0x16d   :  { %v412_v61 = vsub.f32 %v291_v4, %v2391_v25  ;;  %v413_v23 = vsub.f32 %v291_v4, %v2393_v26  ;;  %v306_v4 = vpop.permute.xlu0 %305 }
 0x16e   :  { %v1259_v13 = vmax.f32 %v1161_v63, 0.0  ;;  %v1260_v57 = vmax.f32 %v1162_v60, 0.0  ;;  %v418_v45 = vsub.f32 %v306_v4, %v2391_v25 }
 0x16f   :  { %v510_v35 = vand.u32 2147483647, %v412_v61  ;;  %v511_v33 = vand.u32 2147483647, %v413_v23  ;;  %v564_v61 = vsub.f32 1.0, %v466_v44  ;;  %v565_v23 = vsub.f32 1.0, %v467_v34 }
 0x170   :  { %v1357_v40 = vmul.f32 %v1259_v13, %v660_v51  ;;  %v1358_v48 = vmul.f32 %v1260_v57, %v661_v29  ;;  %v516_v46 = vand.u32 2147483647, %v418_v45 }
 0x171   :  { %v894_v18 = vpop.permute.xlu1 %893  ;;  %v608_v32 = vsub.f32 1.0, %v510_v35  ;;  %v609_v41 = vsub.f32 1.0, %v511_v33  ;;  %v662_v56 = vmax.f32 %v564_v61, 0.0  ;;  %v1262_v35 = vmax.f32 %v1164_v8, 0.0  ;;  %v191_v20 = vpop.permute.xlu0 %190 }
 0x172   :  { %v1011_v39 = vsub.f32 %v894_v18, %v2363_v7  ;;  %v1012_v12 = vsub.f32 %v894_v18, %v2369_v10  ;;  %v1434_v49 = vpack.c.bf16 %v1358_v48, %v1356_v19  ;;  %v1433_v52 = vpack.c.bf16 %v1357_v40, %v1355_v3 }
 0x173   :  { %v706_v62 = vmax.f32 %v608_v32, 0.0  ;;  %v707_v28 = vmax.f32 %v609_v41, 0.0  ;;  %v663_v33 = vmax.f32 %v565_v23, 0.0 }
 0x174   :  { %v1109_v5 = vand.u32 2147483647, %v1011_v39  ;;  %v1110_v58 = vand.u32 2147483647, %v1012_v12  ;;  %1703 = vmatprep.mubr.bf16.mxu0 %v1434_v49 }
 0x175   :  { %1704 = vmatmul.mubr.bf16.gmra.mrb[40].mxu0 %v1433_v52  ;;  %v898_v55 = vpop.permute.xlu1 %897  ;;  %v1261_v52 = vmax.f32 %v1163_v27, 0.0 }
 0x176   :  { %v1207_v0 = vsub.f32 1.0, %v1109_v5  ;;  %v1208_v43 = vsub.f32 1.0, %v1110_v58  ;;  %v1013_v11 = vsub.f32 %v898_v55, %v2363_v7  ;;  %v1014_v17 = vsub.f32 %v898_v55, %v2369_v10 }
 0x178   :  { %v1111_v42 = vand.u32 2147483647, %v1013_v11  ;;  %v1112_v38 = vand.u32 2147483647, %v1014_v17  ;;  %v1305_v30 = vmax.f32 %v1207_v0, 0.0  ;;  %v1306_v47 = vmax.f32 %v1208_v43, 0.0 }
 0x179   :  { %v1359_v0 = vmul.f32 %v1261_v52, %v662_v56  ;;  %v419_v43 = vsub.f32 %v306_v4, %v2393_v26  ;;  %v1360_v17 = vmul.f32 %v1262_v35, %v663_v33 }
 0x17a   :  { %v1209_v16 = vsub.f32 1.0, %v1111_v42  ;;  %v1210_v14 = vsub.f32 1.0, %v1112_v38  ;;  %v186_v9 = vpop.permute.xlu1 %185  ;;  %v1403_v63 = vmul.f32 %v1305_v30, %v706_v62  ;;  %v1404_v60 = vmul.f32 %v1306_v47, %v707_v28  ;;  %v814_v38 = vpop.permute.xlu0 %813 }
 0x17b   :  { %v370_v21 = vsub.f32 %v186_v9, %v2391_v25  ;;  %v371_v6 = vsub.f32 %v186_v9, %v2393_v26  ;;  %v517_v44 = vand.u32 2147483647, %v419_v43  ;;  %v614_v62 = vsub.f32 1.0, %v516_v46 }
 0x17c   :  { %v1307_v59 = vmax.f32 %v1209_v16, 0.0  ;;  %v1308_v2 = vmax.f32 %v1210_v14, 0.0  ;;  %v372_v28 = vsub.f32 %v191_v20, %v2391_v25 }
 0x17d   :  { %v468_v13 = vand.u32 2147483647, %v370_v21  ;;  %v469_v57 = vand.u32 2147483647, %v371_v6  ;;  %v373_v21 = vsub.f32 %v191_v20, %v2393_v26  ;;  %v971_v6 = vsub.f32 %v814_v38, %v2363_v7 }
 0x17e   :  { %v1405_v51 = vmul.f32 %v1307_v59, %v708_v24  ;;  %v1406_v29 = vmul.f32 %v1308_v2, %v709_v31  ;;  %v712_v27 = vmax.f32 %v614_v62, 0.0  ;;  %v470_v8 = vand.u32 2147483647, %v372_v28  ;;  %v910_v20 = vpop.permute.xlu0 %909 }
 0x17f   :  { %v810_v3 = vpop.permute.xlu1 %809  ;;  %v566_v15 = vsub.f32 1.0, %v468_v13  ;;  %v567_v39 = vsub.f32 1.0, %v469_v57  ;;  %v471_v61 = vand.u32 2147483647, %v373_v21 }
 0x180   :  { %v969_v19 = vsub.f32 %v810_v3, %v2363_v7  ;;  %v970_v40 = vsub.f32 %v810_v3, %v2369_v10  ;;  %v1458_v48 = vpack.c.bf16 %v1406_v29, %v1404_v60  ;;  %v1457_v18 = vpack.c.bf16 %v1405_v51, %v1403_v63 }
 0x181   :  { %v664_v36 = vmax.f32 %v566_v15, 0.0  ;;  %v665_v1 = vmax.f32 %v567_v39, 0.0  ;;  %v972_v60 = vsub.f32 %v814_v38, %v2369_v10  ;;  %v615_v51 = vsub.f32 1.0, %v517_v44 }
 0x182   :  { %v1067_v12 = vand.u32 2147483647, %v969_v19  ;;  %v1068_v49 = vand.u32 2147483647, %v970_v40  ;;  %1799 = vmatprep.mubr.bf16.mxu1 %v1458_v48  ;;  %v1069_v3 = vand.u32 2147483647, %v971_v6 }
 0x183   :  { %1800 = vmatmul.mubr.bf16.gmra.mrb[36].mxu1 %v1457_v18  ;;  %v1070_v15 = vand.u32 2147483647, %v972_v60  ;;  %v713_v52 = vmax.f32 %v615_v51, 0.0 }
 0x184   :  { %v1165_v5 = vsub.f32 1.0, %v1067_v12  ;;  %v1166_v58 = vsub.f32 1.0, %v1068_v49  ;;  %v301_v37 = vpop.permute.xlu1 %300 }
 0x185   :  { %v416_v11 = vsub.f32 %v301_v37, %v2391_v25  ;;  %v417_v53 = vsub.f32 %v301_v37, %v2393_v26  ;;  %v1168_v43 = vsub.f32 1.0, %v1070_v15 }
 0x186   :  { %v1263_v22 = vmax.f32 %v1165_v5, 0.0  ;;  %v1264_v55 = vmax.f32 %v1166_v58, 0.0  ;;  %v568_v5 = vsub.f32 1.0, %v470_v8  ;;  %v569_v58 = vsub.f32 1.0, %v471_v61 }
 0x187   :  { %v514_v34 = vand.u32 2147483647, %v416_v11  ;;  %v515_v16 = vand.u32 2147483647, %v417_v53  ;;  %v1266_v21 = vmax.f32 %v1168_v43, 0.0 }
 0x188   :  { %v1361_v32 = vmul.f32 %v1263_v22, %v664_v36  ;;  %v1362_v41 = vmul.f32 %v1264_v55, %v665_v1 }
 0x189   :  { %v902_v42 = vpop.permute.xlu1 %901  ;;  %v612_v4 = vsub.f32 1.0, %v514_v34  ;;  %v613_v29 = vsub.f32 1.0, %v515_v16 }
 0x18a   :  { %v1015_v50 = vsub.f32 %v902_v42, %v2363_v7  ;;  %v1016_v54 = vsub.f32 %v902_v42, %v2369_v10  ;;  %v1436_v30 = vpack.c.bf16 %v1362_v41, %v1360_v17  ;;  %v1435_v47 = vpack.c.bf16 %v1361_v32, %v1359_v0 }
 0x18b   :  { %v710_v39 = vmax.f32 %v612_v4, 0.0  ;;  %v711_v56 = vmax.f32 %v613_v29, 0.0  ;;  %v1167_v0 = vsub.f32 1.0, %v1069_v3  ;;  %v1019_v17 = vsub.f32 %v910_v20, %v2363_v7 }
 0x18c   :  { %v1113_v14 = vand.u32 2147483647, %v1015_v50  ;;  %v1114_v9 = vand.u32 2147483647, %v1016_v54  ;;  %1711 = vmatprep.mubr.bf16.mxu0 %v1436_v30  ;;  %v1020_v32 = vsub.f32 %v910_v20, %v2369_v10  ;;  %v666_v50 = vmax.f32 %v568_v5, 0.0 }
 0x18d   :  { %1712 = vmatmul.mubr.bf16.gmra.mrb[44].mxu0 %v1435_v47  ;;  %v906_v24 = vpop.permute.xlu1 %905  ;;  %v1117_v62 = vand.u32 2147483647, %v1019_v17 }
 0x18e   :  { %v1211_v31 = vsub.f32 1.0, %v1113_v14  ;;  %v1212_v59 = vsub.f32 1.0, %v1114_v9  ;;  %v1017_v2 = vsub.f32 %v906_v24, %v2363_v7  ;;  %v1018_v63 = vsub.f32 %v906_v24, %v2369_v10 }
 0x18f   :  { %v667_v14 = vmax.f32 %v569_v58, 0.0  ;;  %v1118_v28 = vand.u32 2147483647, %v1020_v32  ;;  %v1215_v51 = vsub.f32 1.0, %v1117_v62 }
 0x190   :  { %v1115_v13 = vand.u32 2147483647, %v1017_v2  ;;  %v1116_v57 = vand.u32 2147483647, %v1018_v63  ;;  %v1309_v23 = vmax.f32 %v1211_v31, 0.0  ;;  %v1310_v19 = vmax.f32 %v1212_v59, 0.0 }
 0x191   :  { %v1216_v29 = vsub.f32 1.0, %v1118_v28  ;;  %v1364_v8 = vmul.f32 %v1266_v21, %v667_v14 }
 0x192   :  { %v1213_v40 = vsub.f32 1.0, %v1115_v13  ;;  %v1214_v48 = vsub.f32 1.0, %v1116_v57  ;;  %v196_v18 = vpop.permute.xlu1 %195  ;;  %v1407_v37 = vmul.f32 %v1309_v23, %v710_v39  ;;  %v1408_v36 = vmul.f32 %v1310_v19, %v711_v56 }
 0x193   :  { %v374_v12 = vsub.f32 %v196_v18, %v2391_v25  ;;  %v375_v49 = vsub.f32 %v196_v18, %v2393_v26  ;;  %v1314_v15 = vmax.f32 %v1216_v29, 0.0 }
 0x194   :  { %v1311_v35 = vmax.f32 %v1213_v40, 0.0  ;;  %v1312_v33 = vmax.f32 %v1214_v48, 0.0 }
 0x195   :  { %v472_v45 = vand.u32 2147483647, %v374_v12  ;;  %v473_v55 = vand.u32 2147483647, %v375_v49 }
 0x196   :  { %v1409_v1 = vmul.f32 %v1311_v35, %v712_v27  ;;  %v1410_v22 = vmul.f32 %v1312_v33, %v713_v52 }
 0x197   :  { %v818_v11 = vpop.permute.xlu1 %817  ;;  %v1625_v41 = vpop.f32.mrb[0].mxu0  ;;  %v570_v54 = vsub.f32 1.0, %v472_v45  ;;  %v571_v47 = vsub.f32 1.0, %v473_v55 }
 0x198   :  { %v973_v53 = vsub.f32 %v818_v11, %v2363_v7  ;;  %v974_v46 = vsub.f32 %v818_v11, %v2369_v10  ;;  %v1460_v42 = vpack.c.bf16 %v1410_v22, %v1408_v36  ;;  %v1459_v38 = vpack.c.bf16 %v1409_v1, %v1407_v37  ;;  %1823 = vst [vmem:[#allocation2] sm:$0xff] %v1625_v41  ;;  %v1627_v30 = vpop.f32.mrb[1].mxu0 }
 0x199   :  { %v1628_v44 = vpop.f32.mrb[2].mxu0  ;;  %v1265_v7 = vmax.f32 %v1167_v0, 0.0  ;;  %v668_v2 = vmax.f32 %v570_v54, 0.0  ;;  %v669_v63 = vmax.f32 %v571_v47, 0.0 }
 0x19a   :  { %v1071_v34 = vand.u32 2147483647, %v973_v53  ;;  %v1072_v16 = vand.u32 2147483647, %v974_v46  ;;  %1807 = vmatprep.mubr.bf16.mxu1 %v1460_v42  ;;  %1824 = vst [vmem:[#allocation2 + $0x8] sm:$0xff] %v1628_v44  ;;  %v1630_v9 = vpop.f32.mrb[3].mxu0 }
 0x19b   :  { %1808 = vmatmul.mubr.bf16.gmra.mrb[40].mxu1 %v1459_v38  ;;  %v1363_v27 = vmul.f32 %v1265_v7, %v666_v50 }
 0x19c   :  { %v1169_v10 = vsub.f32 1.0, %v1071_v34  ;;  %v1170_v6 = vsub.f32 1.0, %v1072_v16  ;;  %v311_v24 = vpop.permute.xlu1 %310 }
 0x19d   :  { %v420_v31 = vsub.f32 %v311_v24, %v2391_v25  ;;  %v421_v59 = vsub.f32 %v311_v24, %v2393_v26  ;;  %v1313_v26 = vmax.f32 %v1215_v51, 0.0 }
 0x19e   :  { %v1267_v60 = vmax.f32 %v1169_v10, 0.0  ;;  %v1268_v4 = vmax.f32 %v1170_v6, 0.0 }
 0x19f   :  { %v518_v13 = vand.u32 2147483647, %v420_v31  ;;  %v519_v57 = vand.u32 2147483647, %v421_v59  ;;  %v1633_v3 = vpop.f32.mrb[4].mxu0 }
 0x1a0   :  { %v1365_v61 = vmul.f32 %v1267_v60, %v668_v2  ;;  %v1366_v23 = vmul.f32 %v1268_v4, %v669_v63  ;;  %1825 = vst [vmem:[#allocation2 + $0x10] sm:$0xff] %v1633_v3  ;;  %v1635_v48 = vpop.f32.mrb[5].mxu0 }
 0x1a1   :  { %v616_v19 = vsub.f32 1.0, %v518_v13  ;;  %v617_v40 = vsub.f32 1.0, %v519_v57  ;;  %v1636_v49 = vpop.f32.mrb[6].mxu0 }
 0x1a2   :  { %v1438_v25 = vpack.c.bf16 %v1366_v23, %v1364_v8  ;;  %v1437_v18 = vpack.c.bf16 %v1365_v61, %v1363_v27  ;;  %v1729_v52 = vpop.f32.mrb[0].mxu1  ;;  %1826 = vst [vmem:[#allocation2 + $0x18] sm:$0xff] %v1636_v49  ;;  %v1638_v56 = vpop.f32.mrb[7].mxu0 }
 0x1a3   :  { %v714_v39 = vmax.f32 %v616_v19, 0.0  ;;  %v715_v12 = vmax.f32 %v617_v40, 0.0  ;;  %1849 = vst [vmem:[#allocation2 + $0xd0] sm:$0xff] %v1729_v52  ;;  %v1731_v35 = vpop.f32.mrb[1].mxu1 }
 0x1a4   :  { %1719 = vmatprep.mubr.bf16.mxu0 %v1438_v25  ;;  %v1732_v5 = vpop.f32.mrb[2].mxu1 }
 0x1a5   :  { %v1411_v33 = vmul.f32 %v1313_v26, %v714_v39  ;;  %v1412_v20 = vmul.f32 %v1314_v15, %v715_v12  ;;  %1720 = vmatmul.mubr.bf16.gmra.mrb[48].mxu0 %v1437_v18  ;;  %1850 = vst [vmem:[#allocation2 + $0xd8] sm:$0xff] %v1732_v5  ;;  %v1734_v58 = vpop.f32.mrb[3].mxu1 }
 0x1a7   :  { %v1462_v37 = vpack.c.bf16 %v1412_v20, %v1412_v20  ;;  %v1461_v45 = vpack.c.bf16 %v1411_v33, %v1411_v33  ;;  %v1641_v36 = vpop.f32.mrb[8].mxu0 }
 0x1a8   :  { %1827 = vst [vmem:[#allocation2 + $0x20] sm:$0xff] %v1641_v36  ;;  %v1643_v1 = vpop.f32.mrb[9].mxu0 }
 0x1a9   :  { %1815 = vmatprep.mubr.bf16.mxu1 %v1462_v37  ;;  %v1644_v22 = vpop.f32.mrb[10].mxu0 }
 0x1aa   :  { %1816 = vmatmul.mubr.bf16.gmra.mrb[44].mxu1 %v1461_v45  ;;  %1828 = vst [vmem:[#allocation2 + $0x28] sm:$0xff] %v1644_v22  ;;  %v1646_v0 = vpop.f32.mrb[11].mxu0 }
 0x1ac   :  { %v1737_v55 = vpop.f32.mrb[4].mxu1 }
 0x1ad   :  { %1851 = vst [vmem:[#allocation2 + $0xe0] sm:$0xff] %v1737_v55  ;;  %v1739_v43 = vpop.f32.mrb[5].mxu1 }
 0x1ae   :  { %v1740_v11 = vpop.f32.mrb[6].mxu1 }
 0x1af   :  { %1852 = vst [vmem:[#allocation2 + $0xe8] sm:$0xff] %v1740_v11  ;;  %v1742_v17 = vpop.f32.mrb[7].mxu1 }
 0x1b1   :  { %v1649_v32 = vpop.f32.mrb[12].mxu0 }
 0x1b2   :  { %1829 = vst [vmem:[#allocation2 + $0x30] sm:$0xff] %v1649_v32  ;;  %v1651_v41 = vpop.f32.mrb[13].mxu0 }
 0x1b3   :  { %v1652_v53 = vpop.f32.mrb[14].mxu0 }
 0x1b4   :  { %1830 = vst [vmem:[#allocation2 + $0x38] sm:$0xff] %v1652_v53  ;;  %v1654_v46 = vpop.f32.mrb[15].mxu0 }
 0x1b6   :  { %v1745_v42 = vpop.f32.mrb[8].mxu1 }
 0x1b7   :  { %1853 = vst [vmem:[#allocation2 + $0xf0] sm:$0xff] %v1745_v42  ;;  %v1747_v38 = vpop.f32.mrb[9].mxu1 }
 0x1b8   :  { %v1748_v50 = vpop.f32.mrb[10].mxu1 }
 0x1b9   :  { %1854 = vst [vmem:[#allocation2 + $0xf8] sm:$0xff] %v1748_v50  ;;  %v1750_v54 = vpop.f32.mrb[11].mxu1 }
 0x1bc   :  { %v1657_v30 = vpop.f32.mrb[16].mxu0 }
 0x1bd   :  { %1831 = vst [vmem:[#allocation2 + $0x40] sm:$0xff] %v1657_v30  ;;  %v1659_v47 = vpop.f32.mrb[17].mxu0 }
 0x1be   :  { %v1660_v44 = vpop.f32.mrb[18].mxu0 }
 0x1bf   :  { %1832 = vst [vmem:[#allocation2 + $0x48] sm:$0xff] %v1660_v44  ;;  %v1662_v34 = vpop.f32.mrb[19].mxu0 }
 0x1c8   :  { %v1753_v16 = vpop.f32.mrb[12].mxu1 }
 0x1c9   :  { %1855 = vst [vmem:[#allocation2 + $0x100] sm:$0xff] %v1753_v16  ;;  %v1755_v14 = vpop.f32.mrb[13].mxu1 }
 0x1ca   :  { %v1756_v9 = vpop.f32.mrb[14].mxu1 }
 0x1cb   :  { %1856 = vst [vmem:[#allocation2 + $0x108] sm:$0xff] %v1756_v9  ;;  %v1758_v62 = vpop.f32.mrb[15].mxu1 }
 0x1d1   :  { %v1665_v28 = vpop.f32.mrb[20].mxu0 }
 0x1d2   :  { %1833 = vst [vmem:[#allocation2 + $0x50] sm:$0xff] %v1665_v28  ;;  %v1667_v7 = vpop.f32.mrb[21].mxu0 }
 0x1d3   :  { %v1668_v21 = vpop.f32.mrb[22].mxu0 }
 0x1d4   :  { %1834 = vst [vmem:[#allocation2 + $0x58] sm:$0xff] %v1668_v21  ;;  %v1670_v10 = vpop.f32.mrb[23].mxu0 }
 0x1e0   :  { %v1761_v6 = vpop.f32.mrb[16].mxu1 }
 0x1e1   :  { %1857 = vst [vmem:[#allocation2 + $0x110] sm:$0xff] %v1761_v6  ;;  %v1763_v24 = vpop.f32.mrb[17].mxu1 }
 0x1e2   :  { %v1764_v31 = vpop.f32.mrb[18].mxu1 }
 0x1e3   :  { %1858 = vst [vmem:[#allocation2 + $0x118] sm:$0xff] %v1764_v31  ;;  %v1766_v59 = vpop.f32.mrb[19].mxu1 }
 0x1ea   :  { %v1673_v2 = vpop.f32.mrb[24].mxu0 }
 0x1eb   :  { %1835 = vst [vmem:[#allocation2 + $0x60] sm:$0xff] %v1673_v2  ;;  %v1675_v63 = vpop.f32.mrb[25].mxu0 }
 0x1ec   :  { %v1676_v60 = vpop.f32.mrb[26].mxu0 }
 0x1ed   :  { %1836 = vst [vmem:[#allocation2 + $0x68] sm:$0xff] %v1676_v60  ;;  %v1678_v4 = vpop.f32.mrb[27].mxu0 }
 0x1f6   :  { %v1769_v51 = vpop.f32.mrb[20].mxu1 }
 0x1f7   :  { %1859 = vst [vmem:[#allocation2 + $0x120] sm:$0xff] %v1769_v51  ;;  %v1771_v29 = vpop.f32.mrb[21].mxu1 }
 0x1f8   :  { %v1772_v13 = vpop.f32.mrb[22].mxu1 }
 0x1f9   :  { %1860 = vst [vmem:[#allocation2 + $0x128] sm:$0xff] %v1772_v13  ;;  %v1774_v57 = vpop.f32.mrb[23].mxu1 }
 0x200   :  { %v1681_v27 = vpop.f32.mrb[28].mxu0 }
 0x201   :  { %1837 = vst [vmem:[#allocation2 + $0x70] sm:$0xff] %v1681_v27  ;;  %v1683_v8 = vpop.f32.mrb[29].mxu0 }
 0x202   :  { %v1684_v61 = vpop.f32.mrb[30].mxu0 }
 0x203   :  { %1838 = vst [vmem:[#allocation2 + $0x78] sm:$0xff] %v1684_v61  ;;  %v1686_v23 = vpop.f32.mrb[31].mxu0 }
 0x20e   :  { %v1777_v3 = vpop.f32.mrb[24].mxu1 }
 0x20f   :  { %1861 = vst [vmem:[#allocation2 + $0x130] sm:$0xff] %v1777_v3  ;;  %v1779_v19 = vpop.f32.mrb[25].mxu1 }
 0x210   :  { %v1780_v40 = vpop.f32.mrb[26].mxu1 }
 0x211   :  { %1862 = vst [vmem:[#allocation2 + $0x138] sm:$0xff] %v1780_v40  ;;  %v1782_v48 = vpop.f32.mrb[27].mxu1 }
 0x218   :  { %v1689_v25 = vpop.f32.mrb[32].mxu0 }
 0x219   :  { %1839 = vst [vmem:[#allocation2 + $0x80] sm:$0xff] %v1689_v25  ;;  %v1691_v18 = vpop.f32.mrb[33].mxu0 }
 0x21a   :  { %v1692_v26 = vpop.f32.mrb[34].mxu0 }
 0x21b   :  { %1840 = vst [vmem:[#allocation2 + $0x88] sm:$0xff] %v1692_v26  ;;  %v1694_v15 = vpop.f32.mrb[35].mxu0 }
 0x226   :  { %v1785_v39 = vpop.f32.mrb[28].mxu1 }
 0x227   :  { %1863 = vst [vmem:[#allocation2 + $0x140] sm:$0xff] %v1785_v39  ;;  %v1787_v12 = vpop.f32.mrb[29].mxu1 }
 0x228   :  { %v1788_v49 = vpop.f32.mrb[30].mxu1 }
 0x229   :  { %1864 = vst [vmem:[#allocation2 + $0x148] sm:$0xff] %v1788_v49  ;;  %v1790_v52 = vpop.f32.mrb[31].mxu1 }
 0x230   :  { %v1697_v56 = vpop.f32.mrb[36].mxu0 }
 0x231   :  { %1841 = vst [vmem:[#allocation2 + $0x90] sm:$0xff] %v1697_v56  ;;  %v1699_v35 = vpop.f32.mrb[37].mxu0 }
 0x232   :  { %v1700_v33 = vpop.f32.mrb[38].mxu0 }
 0x233   :  { %1842 = vst [vmem:[#allocation2 + $0x98] sm:$0xff] %v1700_v33  ;;  %v1702_v20 = vpop.f32.mrb[39].mxu0 }
 0x23e   :  { %v1793_v5 = vpop.f32.mrb[32].mxu1 }
 0x23f   :  { %1865 = vst [vmem:[#allocation2 + $0x150] sm:$0xff] %v1793_v5  ;;  %v1795_v58 = vpop.f32.mrb[33].mxu1 }
 0x240   :  { %v1796_v37 = vpop.f32.mrb[34].mxu1 }
 0x241   :  { %1866 = vst [vmem:[#allocation2 + $0x158] sm:$0xff] %v1796_v37  ;;  %v1798_v45 = vpop.f32.mrb[35].mxu1 }
 0x248   :  { %v1705_v36 = vpop.f32.mrb[40].mxu0 }
 0x249   :  { %1843 = vst [vmem:[#allocation2 + $0xa0] sm:$0xff] %v1705_v36  ;;  %v1707_v1 = vpop.f32.mrb[41].mxu0 }
 0x24a   :  { %v1708_v22 = vpop.f32.mrb[42].mxu0 }
 0x24b   :  { %1844 = vst [vmem:[#allocation2 + $0xa8] sm:$0xff] %v1708_v22  ;;  %v1710_v55 = vpop.f32.mrb[43].mxu0 }
 0x256   :  { %v1801_v0 = vpop.f32.mrb[36].mxu1 }
 0x257   :  { %1867 = vst [vmem:[#allocation2 + $0x160] sm:$0xff] %v1801_v0  ;;  %v1803_v43 = vpop.f32.mrb[37].mxu1 }
 0x258   :  { %v1804_v11 = vpop.f32.mrb[38].mxu1 }
 0x259   :  { %1868 = vst [vmem:[#allocation2 + $0x168] sm:$0xff] %v1804_v11  ;;  %v1806_v17 = vpop.f32.mrb[39].mxu1 }
 0x260   :  { %v1713_v32 = vpop.f32.mrb[44].mxu0 }
 0x261   :  { %1845 = vst [vmem:[#allocation2 + $0xb0] sm:$0xff] %v1713_v32  ;;  %v1715_v41 = vpop.f32.mrb[45].mxu0 }
 0x262   :  { %v1716_v53 = vpop.f32.mrb[46].mxu0 }
 0x263   :  { %1846 = vst [vmem:[#allocation2 + $0xb8] sm:$0xff] %v1716_v53  ;;  %v1718_v46 = vpop.f32.mrb[47].mxu0 }
 0x26e   :  { %v1809_v42 = vpop.f32.mrb[40].mxu1 }
 0x26f   :  { %1869 = vst [vmem:[#allocation2 + $0x170] sm:$0xff] %v1809_v42  ;;  %v1811_v38 = vpop.f32.mrb[41].mxu1 }
 0x270   :  { %v1812_v50 = vpop.f32.mrb[42].mxu1 }
 0x271   :  { %1870 = vst [vmem:[#allocation2 + $0x178] sm:$0xff] %v1812_v50  ;;  %v1814_v54 = vpop.f32.mrb[43].mxu1 }
 0x278   :  { %v1721_v30 = vpop.f32.mrb[48].mxu0 }
 0x279   :  { %1847 = vst [vmem:[#allocation2 + $0xc0] sm:$0xff] %v1721_v30  ;;  %v1723_v47 = vpop.f32.mrb[49].mxu0 }
 0x27a   :  { %v1724_v44 = vpop.f32.mrb[50].mxu0 }
 0x27b   :  { %1848 = vst [vmem:[#allocation2 + $0xc8] sm:$0xff] %v1724_v44  ;;  %v1726_v34 = vpop.f32.mrb[51].mxu0 }
 0x27d   :  { %v1817_v16 = vpop.f32.mrb[44].mxu1 }
 0x27e   :  { %1871 = vst [vmem:[#allocation2 + $0x180] sm:$0xff] %v1817_v16  ;;  %v1819_v14 = vpop.f32.mrb[45].mxu1 }
 0x27f   :  { %v1820_v9 = vpop.f32.mrb[46].mxu1 }
 0x280   :  { %2022 = shalt.err (!%p2019_p4)
}
 0x281   :  { %s2023_s14 = scalar_lea.hbm %s2851_s3, 6272 }
 0x282   :  { %p2024_p5 = scmp.ne.s32.totalorder %s2851_s3, %s2023_s14  ;;  %p2027_p6 = scmp.lt.u32.totalorder %s2023_s14, %s2851_s3 }
 0x284   :  { %p2029_p7 = pnand %p2027_p6, %p2024_p5 }
 0x286   :  { %2032 = shalt.err (!%p2029_p7)
}
 0x287   :  { %s2038_s19 = smov 128   ;;  %s2039_s20 = smov 8   ;;  %v1821_v62 = vpop.f32.mrb[47].mxu1 }
 0x288   :  { %1883 = dma.vmem_to_hbm [thread:$0]  %s1878_s11, 6272, %s2851_s3, [#allocation3], %s2038_s19, %s2038_s19, %s2039_s20  }
 0x289   :  { %2033 = dma.done.wait [#allocation3], 6272  }
 0x28a   :  { %2034 = vsyncadd [#allocation3], 4294961024 }
 0x28b   :  { %1887 = vsyncpa [#allocation3], 1 }

</bundles_post_ra>
